<compile_context>
chip_gen: v7x
topology: tpu7x:2x2x1
jax: 0.10.0
libtpu: 0.0.40
codegen_flags: <defaults>
</compile_context>

<pallas_src>
import functools

import jax
import jax.numpy as jnp
from jax.experimental import pallas as pl
from jax.experimental.pallas import tpu as pltpu


# -----------------------------------------------------------------------------
# Fused kernel: [LSTM layer 0 -> LSTM layer 1 -> ... -> Linear head]
# -----------------------------------------------------------------------------
def _fused_lstm_head_kernel(*refs, num_layers):
    """refs = [x, (W_ih^T, W_hh^T, bias) * L, W_out^T, b_out, out, hseq_scr].

    x:        (S*B, I)   time-major, flattened
    W_ih^T:   (I_l, 4H)  PyTorch weight transposed; gate order (i, f, g, o)
    W_hh^T:   (H, 4H)
    bias:     (1, 4H)    b_ih + b_hh combined
    W_out^T:  (H, P)
    b_out:    (1, P)
    out:      (B, P)
    hseq_scr: (S*B, H)   VMEM scratch holding a layer's full hidden sequence
    """
    x_ref = refs[0]
    wout_ref = refs[1 + 3 * num_layers]
    bout_ref = refs[2 + 3 * num_layers]
    out_ref = refs[3 + 3 * num_layers]
    hseq_scr = refs[4 + 3 * num_layers]

    B = out_ref.shape[0]
    S = x_ref.shape[0] // B

    layer_in = x_ref[...]                                    # (S*B, I_l)

    h = None
    for layer in range(num_layers):
        wih = refs[1 + 3 * layer][...]                       # (I_l, 4H)
        whh = refs[2 + 3 * layer][...]                       # (H, 4H)
        bias = refs[3 + 3 * layer][...]                      # (1, 4H)
        H = whh.shape[0]
        last_layer = layer == num_layers - 1

        # Time-invariant input projection for the WHOLE sequence: one
        # (S*B, I) x (I, 4H) matmul instead of S degenerate M=B matmuls.
        # Bias folded in here, once (not per timestep).
        proj = (
            jnp.dot(layer_in, wih, preferred_element_type=jnp.float32) + bias
        )                                                    # (S*B, 4H)

        h = jnp.zeros((B, H), jnp.float32)
        c = jnp.zeros((B, H), jnp.float32)

        # S is small and static: a trace-time-unrolled loop gives the
        # scheduler full visibility; live state is just two (B, H) tiles.
        for t in range(S):
            g = proj[t * B:(t + 1) * B, :] + jnp.dot(
                h, whh, preferred_element_type=jnp.float32)  # (B, 4H)
            i_g = jax.nn.sigmoid(g[:, 0 * H:1 * H])
            f_g = jax.nn.sigmoid(g[:, 1 * H:2 * H])
            g_g = jnp.tanh(g[:, 2 * H:3 * H])
            o_g = jax.nn.sigmoid(g[:, 3 * H:4 * H])
            c = f_g * c + i_g * g_g
            h = o_g * jnp.tanh(c)
            if not last_layer:
                # Keep the full hidden sequence in VMEM for the next layer's
                # batched input projection (never materialized in HBM).
                hseq_scr[t * B:(t + 1) * B, :] = h

        if not last_layer:
            layer_in = hseq_scr[...]                         # (S*B, H)

    # Linear head on the final hidden state only -> (B, P) is the sole output.
    out_ref[...] = (
        jnp.dot(h, wout_ref[...], preferred_element_type=jnp.float32)
        + bout_ref[...]
    ).astype(out_ref.dtype)


# -----------------------------------------------------------------------------
# One-time parameter preparation (hoisted out of the forward path)
# -----------------------------------------------------------------------------
def prepare_params(lstm_params, w_out, b_out):
    """Transpose weights and combine biases once (inputs in PyTorch layout)."""
    prepared = tuple(
        (jnp.transpose(w_ih), jnp.transpose(w_hh), (b_ih + b_hh)[None, :])
        for (w_ih, w_hh, b_ih, b_hh) in lstm_params
    )
    return prepared, jnp.transpose(w_out), b_out[None, :]


# -----------------------------------------------------------------------------
# StockPredictor forward (unidirectional, p=0)
# -----------------------------------------------------------------------------
def stock_predictor_forward(x, prepared_lstm, w_out_t, b_out_row,
                            batch_size, input_size):
    """Mirrors StockPredictor.forward.

    x: (batch_size, seq_len, input_size).  NOTE: like the PyTorch original,
    the (batch, seq) -> (seq, batch) move is a *view/reshape*, which is only a
    valid layout change for batch_size == 1 (replicated here on purpose).
    """
    seq_len = x.shape[1]
    num_layers = len(prepared_lstm)
    hidden = prepared_lstm[0][1].shape[0]
    pred_window = w_out_t.shape[1]

    # model_in = x.view(seq_len, batch, input), then flatten time-major.
    x_flat = jnp.reshape(x.astype(jnp.float32),
                         (seq_len * batch_size, input_size))

    inputs = [x_flat]
    for (w_ih_t, w_hh_t, bias) in prepared_lstm:
        inputs += [w_ih_t, w_hh_t, bias]
    inputs += [w_out_t, b_out_row]

    kernel = functools.partial(_fused_lstm_head_kernel, num_layers=num_layers)

    return pl.pallas_call(
        kernel,
        out_shape=jax.ShapeDtypeStruct((batch_size, pred_window), jnp.float32),
        in_specs=[pl.BlockSpec(memory_space=pltpu.MemorySpace.VMEM)
                  for _ in inputs],
        out_specs=pl.BlockSpec(memory_space=pltpu.MemorySpace.VMEM),
        scratch_shapes=[
            pltpu.VMEM((seq_len * batch_size, hidden), jnp.float32),
        ],
    )(*inputs)


# -----------------------------------------------------------------------------
# Pure-JAX reference (for correctness check only)
# -----------------------------------------------------------------------------
def _ref_forward(x, lstm_params, w_out, b_out, batch_size, input_size):
    seq_len = x.shape[1]
    h_seq = jnp.reshape(x.astype(jnp.float32), (seq_len, batch_size, input_size))
    for (w_ih, w_hh, b_ih, b_hh) in lstm_params:
        H = w_hh.shape[1]
        B = h_seq.shape[1]

        def step(carry, xt):
            h, c = carry
            gates = xt @ w_ih.T + h @ w_hh.T + b_ih + b_hh
            i_g = jax.nn.sigmoid(gates[:, :H])
            f_g = jax.nn.sigmoid(gates[:, H:2 * H])
            g_g = jnp.tanh(gates[:, 2 * H:3 * H])
            o_g = jax.nn.sigmoid(gates[:, 3 * H:])
            c = f_g * c + i_g * g_g
            h = o_g * jnp.tanh(c)
            return (h, c), h

        init = (jnp.zeros((B, H), jnp.float32), jnp.zeros((B, H), jnp.float32))
        _, h_seq = jax.lax.scan(step, init, h_seq)
    h_last = jnp.reshape(h_seq[-1], (batch_size, -1))
    return h_last @ w_out.T + b_out


if __name__ == "__main__":
    # Module config (bidirectional=False, p=0)
    input_size = 4
    hidden_size = 32
    num_layers = 2
    prediction_window = 5
    batch_size = 1
    seq_len = 8

    key = jax.random.PRNGKey(0)

    # Deterministic parameter init (PyTorch LSTM shapes; gate order i,f,g,o)
    lstm_params = []
    layer_in = input_size
    for _ in range(num_layers):
        key, k1, k2, k3, k4 = jax.random.split(key, 5)
        scale = 1.0 / jnp.sqrt(hidden_size)
        w_ih = jax.random.uniform(k1, (4 * hidden_size, layer_in), jnp.float32,
                                  -scale, scale)
        w_hh = jax.random.uniform(k2, (4 * hidden_size, hidden_size), jnp.float32,
                                  -scale, scale)
        b_ih = jax.random.uniform(k3, (4 * hidden_size,), jnp.float32, -scale, scale)
        b_hh = jax.random.uniform(k4, (4 * hidden_size,), jnp.float32, -scale, scale)
        lstm_params.append((w_ih, w_hh, b_ih, b_hh))
        layer_in = hidden_size

    key, k5, k6, kx = jax.random.split(key, 4)
    w_out = jax.random.uniform(k5, (prediction_window, hidden_size), jnp.float32,
                               -1.0 / jnp.sqrt(hidden_size), 1.0 / jnp.sqrt(hidden_size))
    b_out = jax.random.uniform(k6, (prediction_window,), jnp.float32,
                               -1.0 / jnp.sqrt(hidden_size), 1.0 / jnp.sqrt(hidden_size))

    # Input: (batch_size, seq_len, input_size) -> viewed as (seq, batch, input)
    x = jax.random.normal(kx, (batch_size, seq_len, input_size), jnp.float32)

    # One-time weight prep (transpose / combine biases), hoisted out of forward.
    prepared_lstm, w_out_t, b_out_row = prepare_params(lstm_params, w_out, b_out)

    pred = stock_predictor_forward(x, prepared_lstm, w_out_t, b_out_row,
                                   batch_size, input_size)
    pred = jax.block_until_ready(pred)

    ref = _ref_forward(x, lstm_params, w_out, b_out, batch_size, input_size)
    assert pred.shape == (batch_size, prediction_window)
    assert jnp.allclose(pred, ref, atol=1e-5, rtol=1e-5), (pred, ref)

    print("KERNEL_OK")
</pallas_src>

<mosaic_0001>
module attributes {stable_mosaic.version = 11 : i64} {
  func.func @_fused_lstm_head_kernel(%arg0: memref<8x4xf32, #tpu.memory_space<vmem>>, %arg1: memref<4x128xf32, #tpu.memory_space<vmem>>, %arg2: memref<32x128xf32, #tpu.memory_space<vmem>>, %arg3: memref<1x128xf32, #tpu.memory_space<vmem>>, %arg4: memref<32x128xf32, #tpu.memory_space<vmem>>, %arg5: memref<32x128xf32, #tpu.memory_space<vmem>>, %arg6: memref<1x128xf32, #tpu.memory_space<vmem>>, %arg7: memref<32x5xf32, #tpu.memory_space<vmem>>, %arg8: memref<1x5xf32, #tpu.memory_space<vmem>>, %arg9: memref<1x5xf32, #tpu.memory_space<vmem>>, %arg10: memref<8x32xf32, #tpu.memory_space<vmem>>) attributes {dimension_semantics = [], scalar_prefetch = 0 : i64, scratch_operands = 1 : i64, tpu.core_type = #tpu.core_type<tc>} {
    %c0 = arith.constant 0 : index
    %c0_0 = arith.constant 0 : index
    %0 = vector.load %arg0[%c0, %c0_0] : memref<8x4xf32, #tpu.memory_space<vmem>>, vector<8x4xf32>
    %c0_1 = arith.constant 0 : index
    %c0_2 = arith.constant 0 : index
    %1 = vector.load %arg1[%c0_1, %c0_2] : memref<4x128xf32, #tpu.memory_space<vmem>>, vector<4x128xf32>
    %c0_3 = arith.constant 0 : index
    %c0_4 = arith.constant 0 : index
    %2 = vector.load %arg2[%c0_3, %c0_4] : memref<32x128xf32, #tpu.memory_space<vmem>>, vector<32x128xf32>
    %c0_5 = arith.constant 0 : index
    %c0_6 = arith.constant 0 : index
    %3 = vector.load %arg3[%c0_5, %c0_6] : memref<1x128xf32, #tpu.memory_space<vmem>>, vector<1x128xf32>
    %cst = arith.constant dense<0.000000e+00> : vector<8x128xf32>
    %4 = tpu.matmul %0, %1, %cst {dimension_numbers = #tpu.dot_dimension_numbers<[1], [0], [0], [1], [0, 0, 1, 1], [], []>} : vector<8x4xf32>, vector<4x128xf32>, vector<8x128xf32> -> vector<8x128xf32>
    %5 = vector.broadcast %3 : vector<1x128xf32> to vector<8x128xf32>
    %6 = arith.addf %4, %5 : vector<8x128xf32>
    %cst_7 = arith.constant 0.000000e+00 : f32
    %7 = vector.broadcast %cst_7 : f32 to vector<1x32xf32>
    %cst_8 = arith.constant 0.000000e+00 : f32
    %8 = vector.broadcast %cst_8 : f32 to vector<1x32xf32>
    %9 = vector.extract_strided_slice %6 {offsets = [0, 0], sizes = [1, 128], strides = [1, 1]} : vector<8x128xf32> to vector<1x128xf32>
    %cst_9 = arith.constant dense<0.000000e+00> : vector<1x128xf32>
    %10 = tpu.matmul %7, %2, %cst_9 {dimension_numbers = #tpu.dot_dimension_numbers<[1], [0], [0], [1], [0, 0, 1, 1], [], []>} : vector<1x32xf32>, vector<32x128xf32>, vector<1x128xf32> -> vector<1x128xf32>
    %11 = arith.addf %9, %10 : vector<1x128xf32>
    %12 = vector.extract_strided_slice %11 {offsets = [0, 0], sizes = [1, 32], strides = [1, 1]} : vector<1x128xf32> to vector<1x32xf32>
    %13 = arith.negf %12 : vector<1x32xf32>
    %14 = math.exp %13 : vector<1x32xf32>
    %cst_10 = arith.constant 1.000000e+00 : f32
    %15 = vector.broadcast %cst_10 : f32 to vector<1x32xf32>
    %16 = arith.addf %15, %14 : vector<1x32xf32>
    %17 = arith.divf %15, %16 : vector<1x32xf32>
    %18 = vector.extract_strided_slice %11 {offsets = [0, 32], sizes = [1, 32], strides = [1, 1]} : vector<1x128xf32> to vector<1x32xf32>
    %19 = arith.negf %18 : vector<1x32xf32>
    %20 = math.exp %19 : vector<1x32xf32>
    %cst_11 = arith.constant 1.000000e+00 : f32
    %21 = vector.broadcast %cst_11 : f32 to vector<1x32xf32>
    %22 = arith.addf %21, %20 : vector<1x32xf32>
    %23 = arith.divf %21, %22 : vector<1x32xf32>
    %24 = vector.extract_strided_slice %11 {offsets = [0, 64], sizes = [1, 32], strides = [1, 1]} : vector<1x128xf32> to vector<1x32xf32>
    %25 = math.tanh %24 : vector<1x32xf32>
    %26 = vector.extract_strided_slice %11 {offsets = [0, 96], sizes = [1, 32], strides = [1, 1]} : vector<1x128xf32> to vector<1x32xf32>
    %27 = arith.negf %26 : vector<1x32xf32>
    %28 = math.exp %27 : vector<1x32xf32>
    %cst_12 = arith.constant 1.000000e+00 : f32
    %29 = vector.broadcast %cst_12 : f32 to vector<1x32xf32>
    %30 = arith.addf %29, %28 : vector<1x32xf32>
    %31 = arith.divf %29, %30 : vector<1x32xf32>
    %32 = arith.mulf %23, %8 : vector<1x32xf32>
    %33 = arith.mulf %17, %25 : vector<1x32xf32>
    %34 = arith.addf %32, %33 : vector<1x32xf32>
    %35 = math.tanh %34 : vector<1x32xf32>
    %36 = arith.mulf %31, %35 : vector<1x32xf32>
    %c0_13 = arith.constant 0 : index
    %c0_14 = arith.constant 0 : index
    %37 = vector.load %arg10[%c0_13, %c0_14] : memref<8x32xf32, #tpu.memory_space<vmem>>, vector<1x32xf32>
    tpu.vector_store %arg10[%c0_13, %c0_14], %36 {strides = array<i32>} : memref<8x32xf32, #tpu.memory_space<vmem>>, vector<1x32xf32>,
    %38 = vector.extract_strided_slice %6 {offsets = [1, 0], sizes = [1, 128], strides = [1, 1]} : vector<8x128xf32> to vector<1x128xf32>
    %cst_15 = arith.constant dense<0.000000e+00> : vector<1x128xf32>
    %39 = tpu.matmul %36, %2, %cst_15 {dimension_numbers = #tpu.dot_dimension_numbers<[1], [0], [0], [1], [0, 0, 1, 1], [], []>} : vector<1x32xf32>, vector<32x128xf32>, vector<1x128xf32> -> vector<1x128xf32>
    %40 = arith.addf %38, %39 : vector<1x128xf32>
    %41 = vector.extract_strided_slice %40 {offsets = [0, 0], sizes = [1, 32], strides = [1, 1]} : vector<1x128xf32> to vector<1x32xf32>
    %42 = arith.negf %41 : vector<1x32xf32>
    %43 = math.exp %42 : vector<1x32xf32>
    %cst_16 = arith.constant 1.000000e+00 : f32
    %44 = vector.broadcast %cst_16 : f32 to vector<1x32xf32>
    %45 = arith.addf %44, %43 : vector<1x32xf32>
    %46 = arith.divf %44, %45 : vector<1x32xf32>
    %47 = vector.extract_strided_slice %40 {offsets = [0, 32], sizes = [1, 32], strides = [1, 1]} : vector<1x128xf32> to vector<1x32xf32>
    %48 = arith.negf %47 : vector<1x32xf32>
    %49 = math.exp %48 : vector<1x32xf32>
    %cst_17 = arith.constant 1.000000e+00 : f32
    %50 = vector.broadcast %cst_17 : f32 to vector<1x32xf32>
    %51 = arith.addf %50, %49 : vector<1x32xf32>
    %52 = arith.divf %50, %51 : vector<1x32xf32>
    %53 = vector.extract_strided_slice %40 {offsets = [0, 64], sizes = [1, 32], strides = [1, 1]} : vector<1x128xf32> to vector<1x32xf32>
    %54 = math.tanh %53 : vector<1x32xf32>
    %55 = vector.extract_strided_slice %40 {offsets = [0, 96], sizes = [1, 32], strides = [1, 1]} : vector<1x128xf32> to vector<1x32xf32>
    %56 = arith.negf %55 : vector<1x32xf32>
    %57 = math.exp %56 : vector<1x32xf32>
    %cst_18 = arith.constant 1.000000e+00 : f32
    %58 = vector.broadcast %cst_18 : f32 to vector<1x32xf32>
    %59 = arith.addf %58, %57 : vector<1x32xf32>
    %60 = arith.divf %58, %59 : vector<1x32xf32>
    %61 = arith.mulf %52, %34 : vector<1x32xf32>
    %62 = arith.mulf %46, %54 : vector<1x32xf32>
    %63 = arith.addf %61, %62 : vector<1x32xf32>
    %64 = math.tanh %63 : vector<1x32xf32>
    %65 = arith.mulf %60, %64 : vector<1x32xf32>
    %c1 = arith.constant 1 : index
    %c0_19 = arith.constant 0 : index
    %66 = vector.load %arg10[%c1, %c0_19] : memref<8x32xf32, #tpu.memory_space<vmem>>, vector<1x32xf32>
    tpu.vector_store %arg10[%c1, %c0_19], %65 {strides = array<i32>} : memref<8x32xf32, #tpu.memory_space<vmem>>, vector<1x32xf32>,
    %67 = vector.extract_strided_slice %6 {offsets = [2, 0], sizes = [1, 128], strides = [1, 1]} : vector<8x128xf32> to vector<1x128xf32>
    %cst_20 = arith.constant dense<0.000000e+00> : vector<1x128xf32>
    %68 = tpu.matmul %65, %2, %cst_20 {dimension_numbers = #tpu.dot_dimension_numbers<[1], [0], [0], [1], [0, 0, 1, 1], [], []>} : vector<1x32xf32>, vector<32x128xf32>, vector<1x128xf32> -> vector<1x128xf32>
    %69 = arith.addf %67, %68 : vector<1x128xf32>
    %70 = vector.extract_strided_slice %69 {offsets = [0, 0], sizes = [1, 32], strides = [1, 1]} : vector<1x128xf32> to vector<1x32xf32>
    %71 = arith.negf %70 : vector<1x32xf32>
    %72 = math.exp %71 : vector<1x32xf32>
    %cst_21 = arith.constant 1.000000e+00 : f32
    %73 = vector.broadcast %cst_21 : f32 to vector<1x32xf32>
    %74 = arith.addf %73, %72 : vector<1x32xf32>
    %75 = arith.divf %73, %74 : vector<1x32xf32>
    %76 = vector.extract_strided_slice %69 {offsets = [0, 32], sizes = [1, 32], strides = [1, 1]} : vector<1x128xf32> to vector<1x32xf32>
    %77 = arith.negf %76 : vector<1x32xf32>
    %78 = math.exp %77 : vector<1x32xf32>
    %cst_22 = arith.constant 1.000000e+00 : f32
    %79 = vector.broadcast %cst_22 : f32 to vector<1x32xf32>
    %80 = arith.addf %79, %78 : vector<1x32xf32>
    %81 = arith.divf %79, %80 : vector<1x32xf32>
    %82 = vector.extract_strided_slice %69 {offsets = [0, 64], sizes = [1, 32], strides = [1, 1]} : vector<1x128xf32> to vector<1x32xf32>
    %83 = math.tanh %82 : vector<1x32xf32>
    %84 = vector.extract_strided_slice %69 {offsets = [0, 96], sizes = [1, 32], strides = [1, 1]} : vector<1x128xf32> to vector<1x32xf32>
    %85 = arith.negf %84 : vector<1x32xf32>
    %86 = math.exp %85 : vector<1x32xf32>
    %cst_23 = arith.constant 1.000000e+00 : f32
    %87 = vector.broadcast %cst_23 : f32 to vector<1x32xf32>
    %88 = arith.addf %87, %86 : vector<1x32xf32>
    %89 = arith.divf %87, %88 : vector<1x32xf32>
    %90 = arith.mulf %81, %63 : vector<1x32xf32>
    %91 = arith.mulf %75, %83 : vector<1x32xf32>
    %92 = arith.addf %90, %91 : vector<1x32xf32>
    %93 = math.tanh %92 : vector<1x32xf32>
    %94 = arith.mulf %89, %93 : vector<1x32xf32>
    %c2 = arith.constant 2 : index
    %c0_24 = arith.constant 0 : index
    %95 = vector.load %arg10[%c2, %c0_24] : memref<8x32xf32, #tpu.memory_space<vmem>>, vector<1x32xf32>
    tpu.vector_store %arg10[%c2, %c0_24], %94 {strides = array<i32>} : memref<8x32xf32, #tpu.memory_space<vmem>>, vector<1x32xf32>,
    %96 = vector.extract_strided_slice %6 {offsets = [3, 0], sizes = [1, 128], strides = [1, 1]} : vector<8x128xf32> to vector<1x128xf32>
    %cst_25 = arith.constant dense<0.000000e+00> : vector<1x128xf32>
    %97 = tpu.matmul %94, %2, %cst_25 {dimension_numbers = #tpu.dot_dimension_numbers<[1], [0], [0], [1], [0, 0, 1, 1], [], []>} : vector<1x32xf32>, vector<32x128xf32>, vector<1x128xf32> -> vector<1x128xf32>
    %98 = arith.addf %96, %97 : vector<1x128xf32>
    %99 = vector.extract_strided_slice %98 {offsets = [0, 0], sizes = [1, 32], strides = [1, 1]} : vector<1x128xf32> to vector<1x32xf32>
    %100 = arith.negf %99 : vector<1x32xf32>
    %101 = math.exp %100 : vector<1x32xf32>
    %cst_26 = arith.constant 1.000000e+00 : f32
    %102 = vector.broadcast %cst_26 : f32 to vector<1x32xf32>
    %103 = arith.addf %102, %101 : vector<1x32xf32>
    %104 = arith.divf %102, %103 : vector<1x32xf32>
    %105 = vector.extract_strided_slice %98 {offsets = [0, 32], sizes = [1, 32], strides = [1, 1]} : vector<1x128xf32> to vector<1x32xf32>
    %106 = arith.negf %105 : vector<1x32xf32>
    %107 = math.exp %106 : vector<1x32xf32>
    %cst_27 = arith.constant 1.000000e+00 : f32
    %108 = vector.broadcast %cst_27 : f32 to vector<1x32xf32>
    %109 = arith.addf %108, %107 : vector<1x32xf32>
    %110 = arith.divf %108, %109 : vector<1x32xf32>
    %111 = vector.extract_strided_slice %98 {offsets = [0, 64], sizes = [1, 32], strides = [1, 1]} : vector<1x128xf32> to vector<1x32xf32>
    %112 = math.tanh %111 : vector<1x32xf32>
    %113 = vector.extract_strided_slice %98 {offsets = [0, 96], sizes = [1, 32], strides = [1, 1]} : vector<1x128xf32> to vector<1x32xf32>
    %114 = arith.negf %113 : vector<1x32xf32>
    %115 = math.exp %114 : vector<1x32xf32>
    %cst_28 = arith.constant 1.000000e+00 : f32
    %116 = vector.broadcast %cst_28 : f32 to vector<1x32xf32>
    %117 = arith.addf %116, %115 : vector<1x32xf32>
    %118 = arith.divf %116, %117 : vector<1x32xf32>
    %119 = arith.mulf %110, %92 : vector<1x32xf32>
    %120 = arith.mulf %104, %112 : vector<1x32xf32>
    %121 = arith.addf %119, %120 : vector<1x32xf32>
    %122 = math.tanh %121 : vector<1x32xf32>
    %123 = arith.mulf %118, %122 : vector<1x32xf32>
    %c3 = arith.constant 3 : index
    %c0_29 = arith.constant 0 : index
    %124 = vector.load %arg10[%c3, %c0_29] : memref<8x32xf32, #tpu.memory_space<vmem>>, vector<1x32xf32>
    tpu.vector_store %arg10[%c3, %c0_29], %123 {strides = array<i32>} : memref<8x32xf32, #tpu.memory_space<vmem>>, vector<1x32xf32>,
    %125 = vector.extract_strided_slice %6 {offsets = [4, 0], sizes = [1, 128], strides = [1, 1]} : vector<8x128xf32> to vector<1x128xf32>
    %cst_30 = arith.constant dense<0.000000e+00> : vector<1x128xf32>
    %126 = tpu.matmul %123, %2, %cst_30 {dimension_numbers = #tpu.dot_dimension_numbers<[1], [0], [0], [1], [0, 0, 1, 1], [], []>} : vector<1x32xf32>, vector<32x128xf32>, vector<1x128xf32> -> vector<1x128xf32>
    %127 = arith.addf %125, %126 : vector<1x128xf32>
    %128 = vector.extract_strided_slice %127 {offsets = [0, 0], sizes = [1, 32], strides = [1, 1]} : vector<1x128xf32> to vector<1x32xf32>
    %129 = arith.negf %128 : vector<1x32xf32>
    %130 = math.exp %129 : vector<1x32xf32>
    %cst_31 = arith.constant 1.000000e+00 : f32
    %131 = vector.broadcast %cst_31 : f32 to vector<1x32xf32>
    %132 = arith.addf %131, %130 : vector<1x32xf32>
    %133 = arith.divf %131, %132 : vector<1x32xf32>
    %134 = vector.extract_strided_slice %127 {offsets = [0, 32], sizes = [1, 32], strides = [1, 1]} : vector<1x128xf32> to vector<1x32xf32>
    %135 = arith.negf %134 : vector<1x32xf32>
    %136 = math.exp %135 : vector<1x32xf32>
    %cst_32 = arith.constant 1.000000e+00 : f32
    %137 = vector.broadcast %cst_32 : f32 to vector<1x32xf32>
    %138 = arith.addf %137, %136 : vector<1x32xf32>
    %139 = arith.divf %137, %138 : vector<1x32xf32>
    %140 = vector.extract_strided_slice %127 {offsets = [0, 64], sizes = [1, 32], strides = [1, 1]} : vector<1x128xf32> to vector<1x32xf32>
    %141 = math.tanh %140 : vector<1x32xf32>
    %142 = vector.extract_strided_slice %127 {offsets = [0, 96], sizes = [1, 32], strides = [1, 1]} : vector<1x128xf32> to vector<1x32xf32>
    %143 = arith.negf %142 : vector<1x32xf32>
    %144 = math.exp %143 : vector<1x32xf32>
    %cst_33 = arith.constant 1.000000e+00 : f32
    %145 = vector.broadcast %cst_33 : f32 to vector<1x32xf32>
    %146 = arith.addf %145, %144 : vector<1x32xf32>
    %147 = arith.divf %145, %146 : vector<1x32xf32>
    %148 = arith.mulf %139, %121 : vector<1x32xf32>
    %149 = arith.mulf %133, %141 : vector<1x32xf32>
    %150 = arith.addf %148, %149 : vector<1x32xf32>
    %151 = math.tanh %150 : vector<1x32xf32>
    %152 = arith.mulf %147, %151 : vector<1x32xf32>
    %c4 = arith.constant 4 : index
    %c0_34 = arith.constant 0 : index
    %153 = vector.load %arg10[%c4, %c0_34] : memref<8x32xf32, #tpu.memory_space<vmem>>, vector<1x32xf32>
    tpu.vector_store %arg10[%c4, %c0_34], %152 {strides = array<i32>} : memref<8x32xf32, #tpu.memory_space<vmem>>, vector<1x32xf32>,
    %154 = vector.extract_strided_slice %6 {offsets = [5, 0], sizes = [1, 128], strides = [1, 1]} : vector<8x128xf32> to vector<1x128xf32>
    %cst_35 = arith.constant dense<0.000000e+00> : vector<1x128xf32>
    %155 = tpu.matmul %152, %2, %cst_35 {dimension_numbers = #tpu.dot_dimension_numbers<[1], [0], [0], [1], [0, 0, 1, 1], [], []>} : vector<1x32xf32>, vector<32x128xf32>, vector<1x128xf32> -> vector<1x128xf32>
    %156 = arith.addf %154, %155 : vector<1x128xf32>
    %157 = vector.extract_strided_slice %156 {offsets = [0, 0], sizes = [1, 32], strides = [1, 1]} : vector<1x128xf32> to vector<1x32xf32>
    %158 = arith.negf %157 : vector<1x32xf32>
    %159 = math.exp %158 : vector<1x32xf32>
    %cst_36 = arith.constant 1.000000e+00 : f32
    %160 = vector.broadcast %cst_36 : f32 to vector<1x32xf32>
    %161 = arith.addf %160, %159 : vector<1x32xf32>
    %162 = arith.divf %160, %161 : vector<1x32xf32>
    %163 = vector.extract_strided_slice %156 {offsets = [0, 32], sizes = [1, 32], strides = [1, 1]} : vector<1x128xf32> to vector<1x32xf32>
    %164 = arith.negf %163 : vector<1x32xf32>
    %165 = math.exp %164 : vector<1x32xf32>
    %cst_37 = arith.constant 1.000000e+00 : f32
    %166 = vector.broadcast %cst_37 : f32 to vector<1x32xf32>
    %167 = arith.addf %166, %165 : vector<1x32xf32>
    %168 = arith.divf %166, %167 : vector<1x32xf32>
    %169 = vector.extract_strided_slice %156 {offsets = [0, 64], sizes = [1, 32], strides = [1, 1]} : vector<1x128xf32> to vector<1x32xf32>
    %170 = math.tanh %169 : vector<1x32xf32>
    %171 = vector.extract_strided_slice %156 {offsets = [0, 96], sizes = [1, 32], strides = [1, 1]} : vector<1x128xf32> to vector<1x32xf32>
    %172 = arith.negf %171 : vector<1x32xf32>
    %173 = math.exp %172 : vector<1x32xf32>
    %cst_38 = arith.constant 1.000000e+00 : f32
    %174 = vector.broadcast %cst_38 : f32 to vector<1x32xf32>
    %175 = arith.addf %174, %173 : vector<1x32xf32>
    %176 = arith.divf %174, %175 : vector<1x32xf32>
    %177 = arith.mulf %168, %150 : vector<1x32xf32>
    %178 = arith.mulf %162, %170 : vector<1x32xf32>
    %179 = arith.addf %177, %178 : vector<1x32xf32>
    %180 = math.tanh %179 : vector<1x32xf32>
    %181 = arith.mulf %176, %180 : vector<1x32xf32>
    %c5 = arith.constant 5 : index
    %c0_39 = arith.constant 0 : index
    %182 = vector.load %arg10[%c5, %c0_39] : memref<8x32xf32, #tpu.memory_space<vmem>>, vector<1x32xf32>
    tpu.vector_store %arg10[%c5, %c0_39], %181 {strides = array<i32>} : memref<8x32xf32, #tpu.memory_space<vmem>>, vector<1x32xf32>,
    %183 = vector.extract_strided_slice %6 {offsets = [6, 0], sizes = [1, 128], strides = [1, 1]} : vector<8x128xf32> to vector<1x128xf32>
    %cst_40 = arith.constant dense<0.000000e+00> : vector<1x128xf32>
    %184 = tpu.matmul %181, %2, %cst_40 {dimension_numbers = #tpu.dot_dimension_numbers<[1], [0], [0], [1], [0, 0, 1, 1], [], []>} : vector<1x32xf32>, vector<32x128xf32>, vector<1x128xf32> -> vector<1x128xf32>
    %185 = arith.addf %183, %184 : vector<1x128xf32>
    %186 = vector.extract_strided_slice %185 {offsets = [0, 0], sizes = [1, 32], strides = [1, 1]} : vector<1x128xf32> to vector<1x32xf32>
    %187 = arith.negf %186 : vector<1x32xf32>
    %188 = math.exp %187 : vector<1x32xf32>
    %cst_41 = arith.constant 1.000000e+00 : f32
    %189 = vector.broadcast %cst_41 : f32 to vector<1x32xf32>
    %190 = arith.addf %189, %188 : vector<1x32xf32>
    %191 = arith.divf %189, %190 : vector<1x32xf32>
    %192 = vector.extract_strided_slice %185 {offsets = [0, 32], sizes = [1, 32], strides = [1, 1]} : vector<1x128xf32> to vector<1x32xf32>
    %193 = arith.negf %192 : vector<1x32xf32>
    %194 = math.exp %193 : vector<1x32xf32>
    %cst_42 = arith.constant 1.000000e+00 : f32
    %195 = vector.broadcast %cst_42 : f32 to vector<1x32xf32>
    %196 = arith.addf %195, %194 : vector<1x32xf32>
    %197 = arith.divf %195, %196 : vector<1x32xf32>
    %198 = vector.extract_strided_slice %185 {offsets = [0, 64], sizes = [1, 32], strides = [1, 1]} : vector<1x128xf32> to vector<1x32xf32>
    %199 = math.tanh %198 : vector<1x32xf32>
    %200 = vector.extract_strided_slice %185 {offsets = [0, 96], sizes = [1, 32], strides = [1, 1]} : vector<1x128xf32> to vector<1x32xf32>
    %201 = arith.negf %200 : vector<1x32xf32>
    %202 = math.exp %201 : vector<1x32xf32>
    %cst_43 = arith.constant 1.000000e+00 : f32
    %203 = vector.broadcast %cst_43 : f32 to vector<1x32xf32>
    %204 = arith.addf %203, %202 : vector<1x32xf32>
    %205 = arith.divf %203, %204 : vector<1x32xf32>
    %206 = arith.mulf %197, %179 : vector<1x32xf32>
    %207 = arith.mulf %191, %199 : vector<1x32xf32>
    %208 = arith.addf %206, %207 : vector<1x32xf32>
    %209 = math.tanh %208 : vector<1x32xf32>
    %210 = arith.mulf %205, %209 : vector<1x32xf32>
    %c6 = arith.constant 6 : index
    %c0_44 = arith.constant 0 : index
    %211 = vector.load %arg10[%c6, %c0_44] : memref<8x32xf32, #tpu.memory_space<vmem>>, vector<1x32xf32>
    tpu.vector_store %arg10[%c6, %c0_44], %210 {strides = array<i32>} : memref<8x32xf32, #tpu.memory_space<vmem>>, vector<1x32xf32>,
    %212 = vector.extract_strided_slice %6 {offsets = [7, 0], sizes = [1, 128], strides = [1, 1]} : vector<8x128xf32> to vector<1x128xf32>
    %cst_45 = arith.constant dense<0.000000e+00> : vector<1x128xf32>
    %213 = tpu.matmul %210, %2, %cst_45 {dimension_numbers = #tpu.dot_dimension_numbers<[1], [0], [0], [1], [0, 0, 1, 1], [], []>} : vector<1x32xf32>, vector<32x128xf32>, vector<1x128xf32> -> vector<1x128xf32>
    %214 = arith.addf %212, %213 : vector<1x128xf32>
    %215 = vector.extract_strided_slice %214 {offsets = [0, 0], sizes = [1, 32], strides = [1, 1]} : vector<1x128xf32> to vector<1x32xf32>
    %216 = arith.negf %215 : vector<1x32xf32>
    %217 = math.exp %216 : vector<1x32xf32>
    %cst_46 = arith.constant 1.000000e+00 : f32
    %218 = vector.broadcast %cst_46 : f32 to vector<1x32xf32>
    %219 = arith.addf %218, %217 : vector<1x32xf32>
    %220 = arith.divf %218, %219 : vector<1x32xf32>
    %221 = vector.extract_strided_slice %214 {offsets = [0, 32], sizes = [1, 32], strides = [1, 1]} : vector<1x128xf32> to vector<1x32xf32>
    %222 = arith.negf %221 : vector<1x32xf32>
    %223 = math.exp %222 : vector<1x32xf32>
    %cst_47 = arith.constant 1.000000e+00 : f32
    %224 = vector.broadcast %cst_47 : f32 to vector<1x32xf32>
    %225 = arith.addf %224, %223 : vector<1x32xf32>
    %226 = arith.divf %224, %225 : vector<1x32xf32>
    %227 = vector.extract_strided_slice %214 {offsets = [0, 64], sizes = [1, 32], strides = [1, 1]} : vector<1x128xf32> to vector<1x32xf32>
    %228 = math.tanh %227 : vector<1x32xf32>
    %229 = vector.extract_strided_slice %214 {offsets = [0, 96], sizes = [1, 32], strides = [1, 1]} : vector<1x128xf32> to vector<1x32xf32>
    %230 = arith.negf %229 : vector<1x32xf32>
    %231 = math.exp %230 : vector<1x32xf32>
    %cst_48 = arith.constant 1.000000e+00 : f32
    %232 = vector.broadcast %cst_48 : f32 to vector<1x32xf32>
    %233 = arith.addf %232, %231 : vector<1x32xf32>
    %234 = arith.divf %232, %233 : vector<1x32xf32>
    %235 = arith.mulf %226, %208 : vector<1x32xf32>
    %236 = arith.mulf %220, %228 : vector<1x32xf32>
    %237 = arith.addf %235, %236 : vector<1x32xf32>
    %238 = math.tanh %237 : vector<1x32xf32>
    %239 = arith.mulf %234, %238 : vector<1x32xf32>
    %c7 = arith.constant 7 : index
    %c0_49 = arith.constant 0 : index
    %240 = vector.load %arg10[%c7, %c0_49] : memref<8x32xf32, #tpu.memory_space<vmem>>, vector<1x32xf32>
    tpu.vector_store %arg10[%c7, %c0_49], %239 {strides = array<i32>} : memref<8x32xf32, #tpu.memory_space<vmem>>, vector<1x32xf32>,
    %c0_50 = arith.constant 0 : index
    %c0_51 = arith.constant 0 : index
    %241 = vector.load %arg10[%c0_50, %c0_51] : memref<8x32xf32, #tpu.memory_space<vmem>>, vector<8x32xf32>
    %c0_52 = arith.constant 0 : index
    %c0_53 = arith.constant 0 : index
    %242 = vector.load %arg4[%c0_52, %c0_53] : memref<32x128xf32, #tpu.memory_space<vmem>>, vector<32x128xf32>
    %c0_54 = arith.constant 0 : index
    %c0_55 = arith.constant 0 : index
    %243 = vector.load %arg5[%c0_54, %c0_55] : memref<32x128xf32, #tpu.memory_space<vmem>>, vector<32x128xf32>
    %c0_56 = arith.constant 0 : index
    %c0_57 = arith.constant 0 : index
    %244 = vector.load %arg6[%c0_56, %c0_57] : memref<1x128xf32, #tpu.memory_space<vmem>>, vector<1x128xf32>
    %cst_58 = arith.constant dense<0.000000e+00> : vector<8x128xf32>
    %245 = tpu.matmul %241, %242, %cst_58 {dimension_numbers = #tpu.dot_dimension_numbers<[1], [0], [0], [1], [0, 0, 1, 1], [], []>} : vector<8x32xf32>, vector<32x128xf32>, vector<8x128xf32> -> vector<8x128xf32>
    %246 = vector.broadcast %244 : vector<1x128xf32> to vector<8x128xf32>
    %247 = arith.addf %245, %246 : vector<8x128xf32>
    %cst_59 = arith.constant 0.000000e+00 : f32
    %248 = vector.broadcast %cst_59 : f32 to vector<1x32xf32>
    %cst_60 = arith.constant 0.000000e+00 : f32
    %249 = vector.broadcast %cst_60 : f32 to vector<1x32xf32>
    %250 = vector.extract_strided_slice %247 {offsets = [0, 0], sizes = [1, 128], strides = [1, 1]} : vector<8x128xf32> to vector<1x128xf32>
    %cst_61 = arith.constant dense<0.000000e+00> : vector<1x128xf32>
    %251 = tpu.matmul %248, %243, %cst_61 {dimension_numbers = #tpu.dot_dimension_numbers<[1], [0], [0], [1], [0, 0, 1, 1], [], []>} : vector<1x32xf32>, vector<32x128xf32>, vector<1x128xf32> -> vector<1x128xf32>
    %252 = arith.addf %250, %251 : vector<1x128xf32>
    %253 = vector.extract_strided_slice %252 {offsets = [0, 0], sizes = [1, 32], strides = [1, 1]} : vector<1x128xf32> to vector<1x32xf32>
    %254 = arith.negf %253 : vector<1x32xf32>
    %255 = math.exp %254 : vector<1x32xf32>
    %cst_62 = arith.constant 1.000000e+00 : f32
    %256 = vector.broadcast %cst_62 : f32 to vector<1x32xf32>
    %257 = arith.addf %256, %255 : vector<1x32xf32>
    %258 = arith.divf %256, %257 : vector<1x32xf32>
    %259 = vector.extract_strided_slice %252 {offsets = [0, 32], sizes = [1, 32], strides = [1, 1]} : vector<1x128xf32> to vector<1x32xf32>
    %260 = arith.negf %259 : vector<1x32xf32>
    %261 = math.exp %260 : vector<1x32xf32>
    %cst_63 = arith.constant 1.000000e+00 : f32
    %262 = vector.broadcast %cst_63 : f32 to vector<1x32xf32>
    %263 = arith.addf %262, %261 : vector<1x32xf32>
    %264 = arith.divf %262, %263 : vector<1x32xf32>
    %265 = vector.extract_strided_slice %252 {offsets = [0, 64], sizes = [1, 32], strides = [1, 1]} : vector<1x128xf32> to vector<1x32xf32>
    %266 = math.tanh %265 : vector<1x32xf32>
    %267 = vector.extract_strided_slice %252 {offsets = [0, 96], sizes = [1, 32], strides = [1, 1]} : vector<1x128xf32> to vector<1x32xf32>
    %268 = arith.negf %267 : vector<1x32xf32>
    %269 = math.exp %268 : vector<1x32xf32>
    %cst_64 = arith.constant 1.000000e+00 : f32
    %270 = vector.broadcast %cst_64 : f32 to vector<1x32xf32>
    %271 = arith.addf %270, %269 : vector<1x32xf32>
    %272 = arith.divf %270, %271 : vector<1x32xf32>
    %273 = arith.mulf %264, %249 : vector<1x32xf32>
    %274 = arith.mulf %258, %266 : vector<1x32xf32>
    %275 = arith.addf %273, %274 : vector<1x32xf32>
    %276 = math.tanh %275 : vector<1x32xf32>
    %277 = arith.mulf %272, %276 : vector<1x32xf32>
    %278 = vector.extract_strided_slice %247 {offsets = [1, 0], sizes = [1, 128], strides = [1, 1]} : vector<8x128xf32> to vector<1x128xf32>
    %cst_65 = arith.constant dense<0.000000e+00> : vector<1x128xf32>
    %279 = tpu.matmul %277, %243, %cst_65 {dimension_numbers = #tpu.dot_dimension_numbers<[1], [0], [0], [1], [0, 0, 1, 1], [], []>} : vector<1x32xf32>, vector<32x128xf32>, vector<1x128xf32> -> vector<1x128xf32>
    %280 = arith.addf %278, %279 : vector<1x128xf32>
    %281 = vector.extract_strided_slice %280 {offsets = [0, 0], sizes = [1, 32], strides = [1, 1]} : vector<1x128xf32> to vector<1x32xf32>
    %282 = arith.negf %281 : vector<1x32xf32>
    %283 = math.exp %282 : vector<1x32xf32>
    %cst_66 = arith.constant 1.000000e+00 : f32
    %284 = vector.broadcast %cst_66 : f32 to vector<1x32xf32>
    %285 = arith.addf %284, %283 : vector<1x32xf32>
    %286 = arith.divf %284, %285 : vector<1x32xf32>
    %287 = vector.extract_strided_slice %280 {offsets = [0, 32], sizes = [1, 32], strides = [1, 1]} : vector<1x128xf32> to vector<1x32xf32>
    %288 = arith.negf %287 : vector<1x32xf32>
    %289 = math.exp %288 : vector<1x32xf32>
    %cst_67 = arith.constant 1.000000e+00 : f32
    %290 = vector.broadcast %cst_67 : f32 to vector<1x32xf32>
    %291 = arith.addf %290, %289 : vector<1x32xf32>
    %292 = arith.divf %290, %291 : vector<1x32xf32>
    %293 = vector.extract_strided_slice %280 {offsets = [0, 64], sizes = [1, 32], strides = [1, 1]} : vector<1x128xf32> to vector<1x32xf32>
    %294 = math.tanh %293 : vector<1x32xf32>
    %295 = vector.extract_strided_slice %280 {offsets = [0, 96], sizes = [1, 32], strides = [1, 1]} : vector<1x128xf32> to vector<1x32xf32>
    %296 = arith.negf %295 : vector<1x32xf32>
    %297 = math.exp %296 : vector<1x32xf32>
    %cst_68 = arith.constant 1.000000e+00 : f32
    %298 = vector.broadcast %cst_68 : f32 to vector<1x32xf32>
    %299 = arith.addf %298, %297 : vector<1x32xf32>
    %300 = arith.divf %298, %299 : vector<1x32xf32>
    %301 = arith.mulf %292, %275 : vector<1x32xf32>
    %302 = arith.mulf %286, %294 : vector<1x32xf32>
    %303 = arith.addf %301, %302 : vector<1x32xf32>
    %304 = math.tanh %303 : vector<1x32xf32>
    %305 = arith.mulf %300, %304 : vector<1x32xf32>
    %306 = vector.extract_strided_slice %247 {offsets = [2, 0], sizes = [1, 128], strides = [1, 1]} : vector<8x128xf32> to vector<1x128xf32>
    %cst_69 = arith.constant dense<0.000000e+00> : vector<1x128xf32>
    %307 = tpu.matmul %305, %243, %cst_69 {dimension_numbers = #tpu.dot_dimension_numbers<[1], [0], [0], [1], [0, 0, 1, 1], [], []>} : vector<1x32xf32>, vector<32x128xf32>, vector<1x128xf32> -> vector<1x128xf32>
    %308 = arith.addf %306, %307 : vector<1x128xf32>
    %309 = vector.extract_strided_slice %308 {offsets = [0, 0], sizes = [1, 32], strides = [1, 1]} : vector<1x128xf32> to vector<1x32xf32>
    %310 = arith.negf %309 : vector<1x32xf32>
    %311 = math.exp %310 : vector<1x32xf32>
    %cst_70 = arith.constant 1.000000e+00 : f32
    %312 = vector.broadcast %cst_70 : f32 to vector<1x32xf32>
    %313 = arith.addf %312, %311 : vector<1x32xf32>
    %314 = arith.divf %312, %313 : vector<1x32xf32>
    %315 = vector.extract_strided_slice %308 {offsets = [0, 32], sizes = [1, 32], strides = [1, 1]} : vector<1x128xf32> to vector<1x32xf32>
    %316 = arith.negf %315 : vector<1x32xf32>
    %317 = math.exp %316 : vector<1x32xf32>
    %cst_71 = arith.constant 1.000000e+00 : f32
    %318 = vector.broadcast %cst_71 : f32 to vector<1x32xf32>
    %319 = arith.addf %318, %317 : vector<1x32xf32>
    %320 = arith.divf %318, %319 : vector<1x32xf32>
    %321 = vector.extract_strided_slice %308 {offsets = [0, 64], sizes = [1, 32], strides = [1, 1]} : vector<1x128xf32> to vector<1x32xf32>
    %322 = math.tanh %321 : vector<1x32xf32>
    %323 = vector.extract_strided_slice %308 {offsets = [0, 96], sizes = [1, 32], strides = [1, 1]} : vector<1x128xf32> to vector<1x32xf32>
    %324 = arith.negf %323 : vector<1x32xf32>
    %325 = math.exp %324 : vector<1x32xf32>
    %cst_72 = arith.constant 1.000000e+00 : f32
    %326 = vector.broadcast %cst_72 : f32 to vector<1x32xf32>
    %327 = arith.addf %326, %325 : vector<1x32xf32>
    %328 = arith.divf %326, %327 : vector<1x32xf32>
    %329 = arith.mulf %320, %303 : vector<1x32xf32>
    %330 = arith.mulf %314, %322 : vector<1x32xf32>
    %331 = arith.addf %329, %330 : vector<1x32xf32>
    %332 = math.tanh %331 : vector<1x32xf32>
    %333 = arith.mulf %328, %332 : vector<1x32xf32>
    %334 = vector.extract_strided_slice %247 {offsets = [3, 0], sizes = [1, 128], strides = [1, 1]} : vector<8x128xf32> to vector<1x128xf32>
    %cst_73 = arith.constant dense<0.000000e+00> : vector<1x128xf32>
    %335 = tpu.matmul %333, %243, %cst_73 {dimension_numbers = #tpu.dot_dimension_numbers<[1], [0], [0], [1], [0, 0, 1, 1], [], []>} : vector<1x32xf32>, vector<32x128xf32>, vector<1x128xf32> -> vector<1x128xf32>
    %336 = arith.addf %334, %335 : vector<1x128xf32>
    %337 = vector.extract_strided_slice %336 {offsets = [0, 0], sizes = [1, 32], strides = [1, 1]} : vector<1x128xf32> to vector<1x32xf32>
    %338 = arith.negf %337 : vector<1x32xf32>
    %339 = math.exp %338 : vector<1x32xf32>
    %cst_74 = arith.constant 1.000000e+00 : f32
    %340 = vector.broadcast %cst_74 : f32 to vector<1x32xf32>
    %341 = arith.addf %340, %339 : vector<1x32xf32>
    %342 = arith.divf %340, %341 : vector<1x32xf32>
    %343 = vector.extract_strided_slice %336 {offsets = [0, 32], sizes = [1, 32], strides = [1, 1]} : vector<1x128xf32> to vector<1x32xf32>
    %344 = arith.negf %343 : vector<1x32xf32>
    %345 = math.exp %344 : vector<1x32xf32>
    %cst_75 = arith.constant 1.000000e+00 : f32
    %346 = vector.broadcast %cst_75 : f32 to vector<1x32xf32>
    %347 = arith.addf %346, %345 : vector<1x32xf32>
    %348 = arith.divf %346, %347 : vector<1x32xf32>
    %349 = vector.extract_strided_slice %336 {offsets = [0, 64], sizes = [1, 32], strides = [1, 1]} : vector<1x128xf32> to vector<1x32xf32>
    %350 = math.tanh %349 : vector<1x32xf32>
    %351 = vector.extract_strided_slice %336 {offsets = [0, 96], sizes = [1, 32], strides = [1, 1]} : vector<1x128xf32> to vector<1x32xf32>
    %352 = arith.negf %351 : vector<1x32xf32>
    %353 = math.exp %352 : vector<1x32xf32>
    %cst_76 = arith.constant 1.000000e+00 : f32
    %354 = vector.broadcast %cst_76 : f32 to vector<1x32xf32>
    %355 = arith.addf %354, %353 : vector<1x32xf32>
    %356 = arith.divf %354, %355 : vector<1x32xf32>
    %357 = arith.mulf %348, %331 : vector<1x32xf32>
    %358 = arith.mulf %342, %350 : vector<1x32xf32>
    %359 = arith.addf %357, %358 : vector<1x32xf32>
    %360 = math.tanh %359 : vector<1x32xf32>
    %361 = arith.mulf %356, %360 : vector<1x32xf32>
    %362 = vector.extract_strided_slice %247 {offsets = [4, 0], sizes = [1, 128], strides = [1, 1]} : vector<8x128xf32> to vector<1x128xf32>
    %cst_77 = arith.constant dense<0.000000e+00> : vector<1x128xf32>
    %363 = tpu.matmul %361, %243, %cst_77 {dimension_numbers = #tpu.dot_dimension_numbers<[1], [0], [0], [1], [0, 0, 1, 1], [], []>} : vector<1x32xf32>, vector<32x128xf32>, vector<1x128xf32> -> vector<1x128xf32>
    %364 = arith.addf %362, %363 : vector<1x128xf32>
    %365 = vector.extract_strided_slice %364 {offsets = [0, 0], sizes = [1, 32], strides = [1, 1]} : vector<1x128xf32> to vector<1x32xf32>
    %366 = arith.negf %365 : vector<1x32xf32>
    %367 = math.exp %366 : vector<1x32xf32>
    %cst_78 = arith.constant 1.000000e+00 : f32
    %368 = vector.broadcast %cst_78 : f32 to vector<1x32xf32>
    %369 = arith.addf %368, %367 : vector<1x32xf32>
    %370 = arith.divf %368, %369 : vector<1x32xf32>
    %371 = vector.extract_strided_slice %364 {offsets = [0, 32], sizes = [1, 32], strides = [1, 1]} : vector<1x128xf32> to vector<1x32xf32>
    %372 = arith.negf %371 : vector<1x32xf32>
    %373 = math.exp %372 : vector<1x32xf32>
    %cst_79 = arith.constant 1.000000e+00 : f32
    %374 = vector.broadcast %cst_79 : f32 to vector<1x32xf32>
    %375 = arith.addf %374, %373 : vector<1x32xf32>
    %376 = arith.divf %374, %375 : vector<1x32xf32>
    %377 = vector.extract_strided_slice %364 {offsets = [0, 64], sizes = [1, 32], strides = [1, 1]} : vector<1x128xf32> to vector<1x32xf32>
    %378 = math.tanh %377 : vector<1x32xf32>
    %379 = vector.extract_strided_slice %364 {offsets = [0, 96], sizes = [1, 32], strides = [1, 1]} : vector<1x128xf32> to vector<1x32xf32>
    %380 = arith.negf %379 : vector<1x32xf32>
    %381 = math.exp %380 : vector<1x32xf32>
    %cst_80 = arith.constant 1.000000e+00 : f32
    %382 = vector.broadcast %cst_80 : f32 to vector<1x32xf32>
    %383 = arith.addf %382, %381 : vector<1x32xf32>
    %384 = arith.divf %382, %383 : vector<1x32xf32>
    %385 = arith.mulf %376, %359 : vector<1x32xf32>
    %386 = arith.mulf %370, %378 : vector<1x32xf32>
    %387 = arith.addf %385, %386 : vector<1x32xf32>
    %388 = math.tanh %387 : vector<1x32xf32>
    %389 = arith.mulf %384, %388 : vector<1x32xf32>
    %390 = vector.extract_strided_slice %247 {offsets = [5, 0], sizes = [1, 128], strides = [1, 1]} : vector<8x128xf32> to vector<1x128xf32>
    %cst_81 = arith.constant dense<0.000000e+00> : vector<1x128xf32>
    %391 = tpu.matmul %389, %243, %cst_81 {dimension_numbers = #tpu.dot_dimension_numbers<[1], [0], [0], [1], [0, 0, 1, 1], [], []>} : vector<1x32xf32>, vector<32x128xf32>, vector<1x128xf32> -> vector<1x128xf32>
    %392 = arith.addf %390, %391 : vector<1x128xf32>
    %393 = vector.extract_strided_slice %392 {offsets = [0, 0], sizes = [1, 32], strides = [1, 1]} : vector<1x128xf32> to vector<1x32xf32>
    %394 = arith.negf %393 : vector<1x32xf32>
    %395 = math.exp %394 : vector<1x32xf32>
    %cst_82 = arith.constant 1.000000e+00 : f32
    %396 = vector.broadcast %cst_82 : f32 to vector<1x32xf32>
    %397 = arith.addf %396, %395 : vector<1x32xf32>
    %398 = arith.divf %396, %397 : vector<1x32xf32>
    %399 = vector.extract_strided_slice %392 {offsets = [0, 32], sizes = [1, 32], strides = [1, 1]} : vector<1x128xf32> to vector<1x32xf32>
    %400 = arith.negf %399 : vector<1x32xf32>
    %401 = math.exp %400 : vector<1x32xf32>
    %cst_83 = arith.constant 1.000000e+00 : f32
    %402 = vector.broadcast %cst_83 : f32 to vector<1x32xf32>
    %403 = arith.addf %402, %401 : vector<1x32xf32>
    %404 = arith.divf %402, %403 : vector<1x32xf32>
    %405 = vector.extract_strided_slice %392 {offsets = [0, 64], sizes = [1, 32], strides = [1, 1]} : vector<1x128xf32> to vector<1x32xf32>
    %406 = math.tanh %405 : vector<1x32xf32>
    %407 = vector.extract_strided_slice %392 {offsets = [0, 96], sizes = [1, 32], strides = [1, 1]} : vector<1x128xf32> to vector<1x32xf32>
    %408 = arith.negf %407 : vector<1x32xf32>
    %409 = math.exp %408 : vector<1x32xf32>
    %cst_84 = arith.constant 1.000000e+00 : f32
    %410 = vector.broadcast %cst_84 : f32 to vector<1x32xf32>
    %411 = arith.addf %410, %409 : vector<1x32xf32>
    %412 = arith.divf %410, %411 : vector<1x32xf32>
    %413 = arith.mulf %404, %387 : vector<1x32xf32>
    %414 = arith.mulf %398, %406 : vector<1x32xf32>
    %415 = arith.addf %413, %414 : vector<1x32xf32>
    %416 = math.tanh %415 : vector<1x32xf32>
    %417 = arith.mulf %412, %416 : vector<1x32xf32>
    %418 = vector.extract_strided_slice %247 {offsets = [6, 0], sizes = [1, 128], strides = [1, 1]} : vector<8x128xf32> to vector<1x128xf32>
    %cst_85 = arith.constant dense<0.000000e+00> : vector<1x128xf32>
    %419 = tpu.matmul %417, %243, %cst_85 {dimension_numbers = #tpu.dot_dimension_numbers<[1], [0], [0], [1], [0, 0, 1, 1], [], []>} : vector<1x32xf32>, vector<32x128xf32>, vector<1x128xf32> -> vector<1x128xf32>
    %420 = arith.addf %418, %419 : vector<1x128xf32>
    %421 = vector.extract_strided_slice %420 {offsets = [0, 0], sizes = [1, 32], strides = [1, 1]} : vector<1x128xf32> to vector<1x32xf32>
    %422 = arith.negf %421 : vector<1x32xf32>
    %423 = math.exp %422 : vector<1x32xf32>
    %cst_86 = arith.constant 1.000000e+00 : f32
    %424 = vector.broadcast %cst_86 : f32 to vector<1x32xf32>
    %425 = arith.addf %424, %423 : vector<1x32xf32>
    %426 = arith.divf %424, %425 : vector<1x32xf32>
    %427 = vector.extract_strided_slice %420 {offsets = [0, 32], sizes = [1, 32], strides = [1, 1]} : vector<1x128xf32> to vector<1x32xf32>
    %428 = arith.negf %427 : vector<1x32xf32>
    %429 = math.exp %428 : vector<1x32xf32>
    %cst_87 = arith.constant 1.000000e+00 : f32
    %430 = vector.broadcast %cst_87 : f32 to vector<1x32xf32>
    %431 = arith.addf %430, %429 : vector<1x32xf32>
    %432 = arith.divf %430, %431 : vector<1x32xf32>
    %433 = vector.extract_strided_slice %420 {offsets = [0, 64], sizes = [1, 32], strides = [1, 1]} : vector<1x128xf32> to vector<1x32xf32>
    %434 = math.tanh %433 : vector<1x32xf32>
    %435 = vector.extract_strided_slice %420 {offsets = [0, 96], sizes = [1, 32], strides = [1, 1]} : vector<1x128xf32> to vector<1x32xf32>
    %436 = arith.negf %435 : vector<1x32xf32>
    %437 = math.exp %436 : vector<1x32xf32>
    %cst_88 = arith.constant 1.000000e+00 : f32
    %438 = vector.broadcast %cst_88 : f32 to vector<1x32xf32>
    %439 = arith.addf %438, %437 : vector<1x32xf32>
    %440 = arith.divf %438, %439 : vector<1x32xf32>
    %441 = arith.mulf %432, %415 : vector<1x32xf32>
    %442 = arith.mulf %426, %434 : vector<1x32xf32>
    %443 = arith.addf %441, %442 : vector<1x32xf32>
    %444 = math.tanh %443 : vector<1x32xf32>
    %445 = arith.mulf %440, %444 : vector<1x32xf32>
    %446 = vector.extract_strided_slice %247 {offsets = [7, 0], sizes = [1, 128], strides = [1, 1]} : vector<8x128xf32> to vector<1x128xf32>
    %cst_89 = arith.constant dense<0.000000e+00> : vector<1x128xf32>
    %447 = tpu.matmul %445, %243, %cst_89 {dimension_numbers = #tpu.dot_dimension_numbers<[1], [0], [0], [1], [0, 0, 1, 1], [], []>} : vector<1x32xf32>, vector<32x128xf32>, vector<1x128xf32> -> vector<1x128xf32>
    %448 = arith.addf %446, %447 : vector<1x128xf32>
    %449 = vector.extract_strided_slice %448 {offsets = [0, 0], sizes = [1, 32], strides = [1, 1]} : vector<1x128xf32> to vector<1x32xf32>
    %450 = arith.negf %449 : vector<1x32xf32>
    %451 = math.exp %450 : vector<1x32xf32>
    %cst_90 = arith.constant 1.000000e+00 : f32
    %452 = vector.broadcast %cst_90 : f32 to vector<1x32xf32>
    %453 = arith.addf %452, %451 : vector<1x32xf32>
    %454 = arith.divf %452, %453 : vector<1x32xf32>
    %455 = vector.extract_strided_slice %448 {offsets = [0, 32], sizes = [1, 32], strides = [1, 1]} : vector<1x128xf32> to vector<1x32xf32>
    %456 = arith.negf %455 : vector<1x32xf32>
    %457 = math.exp %456 : vector<1x32xf32>
    %cst_91 = arith.constant 1.000000e+00 : f32
    %458 = vector.broadcast %cst_91 : f32 to vector<1x32xf32>
    %459 = arith.addf %458, %457 : vector<1x32xf32>
    %460 = arith.divf %458, %459 : vector<1x32xf32>
    %461 = vector.extract_strided_slice %448 {offsets = [0, 64], sizes = [1, 32], strides = [1, 1]} : vector<1x128xf32> to vector<1x32xf32>
    %462 = math.tanh %461 : vector<1x32xf32>
    %463 = vector.extract_strided_slice %448 {offsets = [0, 96], sizes = [1, 32], strides = [1, 1]} : vector<1x128xf32> to vector<1x32xf32>
    %464 = arith.negf %463 : vector<1x32xf32>
    %465 = math.exp %464 : vector<1x32xf32>
    %cst_92 = arith.constant 1.000000e+00 : f32
    %466 = vector.broadcast %cst_92 : f32 to vector<1x32xf32>
    %467 = arith.addf %466, %465 : vector<1x32xf32>
    %468 = arith.divf %466, %467 : vector<1x32xf32>
    %469 = arith.mulf %460, %443 : vector<1x32xf32>
    %470 = arith.mulf %454, %462 : vector<1x32xf32>
    %471 = arith.addf %469, %470 : vector<1x32xf32>
    %472 = math.tanh %471 : vector<1x32xf32>
    %473 = arith.mulf %468, %472 : vector<1x32xf32>
    %c0_93 = arith.constant 0 : index
    %c0_94 = arith.constant 0 : index
    %474 = vector.load %arg7[%c0_93, %c0_94] : memref<32x5xf32, #tpu.memory_space<vmem>>, vector<32x5xf32>
    %cst_95 = arith.constant dense<0.000000e+00> : vector<1x5xf32>
    %475 = tpu.matmul %473, %474, %cst_95 {dimension_numbers = #tpu.dot_dimension_numbers<[1], [0], [0], [1], [0, 0, 1, 1], [], []>} : vector<1x32xf32>, vector<32x5xf32>, vector<1x5xf32> -> vector<1x5xf32>
    %c0_96 = arith.constant 0 : index
    %c0_97 = arith.constant 0 : index
    %476 = vector.load %arg8[%c0_96, %c0_97] : memref<1x5xf32, #tpu.memory_space<vmem>>, vector<1x5xf32>
    %477 = arith.addf %475, %476 : vector<1x5xf32>
    %c0_98 = arith.constant 0 : index
    %c0_99 = arith.constant 0 : index
    %478 = vector.load %arg9[%c0_98, %c0_99] : memref<1x5xf32, #tpu.memory_space<vmem>>, vector<1x5xf32>
    tpu.vector_store %arg9[%c0_98, %c0_99], %477 {strides = array<i32>} : memref<1x5xf32, #tpu.memory_space<vmem>>, vector<1x5xf32>,
    return
  }
}

</mosaic_0001>

<bundles_post_ra>
// kernel: tpu_custom_call.1
= control target key start
LH: loop header
LB: loop body
LE: loop exit
PB: predicated region body
PF: predicated region fallthrough
CT: control target
= control target key end

     0   :  { %14 = vsyncpa [#allocation4], 0  ;;  %s3106_s0 = inlined_call_operand.vmem [shape: f32[8,4], index: 0, kind: input, shape index: {}]   ;;  %s3107_s1 = inlined_call_operand.hbm [shape: f32[4,128], index: 1, kind: input, shape index: {}]   ;;  %s3108_s2 = inlined_call_operand.vmem [shape: f32[32,128], index: 2, kind: input, shape index: {}]   ;;  %s3109_s3 = inlined_call_operand.vmem [shape: f32[1,128], index: 3, kind: input, shape index: {}]   ;;  %s3110_s4 = inlined_call_operand.vmem [shape: f32[32,128], index: 4, kind: input, shape index: {}]   ;;  %s3111_s5 = inlined_call_operand.hbm [shape: f32[32,128], index: 5, kind: input, shape index: {}]   ;;  %s3112_s6 = inlined_call_operand.vmem [shape: f32[1,128], index: 6, kind: input, shape index: {}]   ;;  %s3113_s7 = inlined_call_operand.vmem [shape: f32[32,5], index: 7, kind: input, shape index: {}]   ;;  %s3114_s8 = inlined_call_operand.vmem [shape: f32[1,5], index: 8, kind: input, shape index: {}]   ;;  %s3115_s9 = inlined_call_operand.hbm [shape: f32[1,5], index: 9, kind: output, shape index: {}]  }
   0x1   :  { %15 = vsyncpa [#allocation7], 0 }
   0x2   :  { %16 = vsyncpa [#allocation5], 0  ;;  %s2716_s30 = smov [#allocation3]   ;;  %s2717_s11 = smov [#allocation6]  }
   0x3   :  { %s25_s10 = sshll.u32 %s2716_s30, 4  ;;  %s40_s12 = sshll.u32 %s2717_s11, 4  ;;  %s26_s10 = int_to_ptr.vmem [resolvable:$true] %s25_s10  ;;  %s2776_s12 = int_to_ptr.vmem [resolvable:$true] %s40_s12 }
   0x4   :  { %s2644_s15 = scalar_lea.hbm %s3107_s1, 64 }
   0x5   :  { %p2645_p0 = scmp.ne.s32.totalorder %s3107_s1, %s2644_s15  ;;  %p2648_p1 = scmp.lt.u32.totalorder %s2644_s15, %s3107_s1 }
   0x7   :  { %p2650_p2 = pnand %p2648_p1, %p2645_p0 }
   0x9   :  { %2653 = shalt.err (!%p2650_p2)
}
   0xa   :  { %s2654_s20 = scalar_lea.vmem %s26_s10, 64  ;;  %p2659_p4 = scmp.lt.s32.totalorder %s26_s10, %s26_s10 }
   0xb   :  { %p2655_p3 = scmp.ne.s32.totalorder %s26_s10, %s2654_s20  ;;  %p2660_p5 = scmp.lt.s32.totalorder %s2654_s20, %s2654_s20 }
   0xd   :  { %p2661_p6 = por %p2660_p5, %p2659_p4 }
   0xf   :  { %p2662_p7 = pnand %p2661_p6, %p2655_p3 }
  0x11   :  { %2665 = shalt.err (!%p2662_p7)
}
  0x12   :  { %28 = dma.hbm_to_vmem [thread:$0]  %s3107_s1, 64, %s26_s10, [#allocation4]  }
  0x13   :  { %s2666_s25 = scalar_lea.hbm %s3111_s5, 512 }
  0x14   :  { %p2667_p8 = scmp.ne.s32.totalorder %s3111_s5, %s2666_s25  ;;  %p2670_p9 = scmp.lt.u32.totalorder %s2666_s25, %s3111_s5 }
  0x16   :  { %p2672_p10 = pnand %p2670_p9, %p2667_p8 }
  0x18   :  { %2675 = shalt.err (!%p2672_p10)
}
  0x19   :  { %s2676_s30 = scalar_lea.vmem %s2776_s12, 512  ;;  %p2681_p12 = scmp.lt.s32.totalorder %s2776_s12, %s2776_s12 }
  0x1a   :  { %p2677_p11 = scmp.ne.s32.totalorder %s2776_s12, %s2676_s30  ;;  %p2682_p13 = scmp.lt.s32.totalorder %s2676_s30, %s2676_s30 }
  0x1c   :  { %p2683_p0 = por %p2682_p13, %p2681_p12 }
  0x1e   :  { %p2684_p1 = pnand %p2683_p0, %p2677_p11 }
  0x20   :  { %2687 = shalt.err (!%p2684_p1)
}
  0x21   :  { %s2718_s1 = smov 128   ;;  %s2719_s10 = smov 8  }
  0x22   :  { %46 = dma.hbm_to_vmem [thread:$0]  %s3111_s5, 512, %s2776_s12, [#allocation7], %s2718_s1, %s2718_s1, %s2719_s10  }
  0x23   :  { %2710 = dma.done.wait [#allocation4], 64  }
  0x24   :  { %2711 = vsyncadd [#allocation4], 4294967232 }
  0x25   :  { %2712 = dma.done.wait [#allocation7], 512  }
  0x26   :  { %2713 = vsyncadd [#allocation7], 4294966784  ;;  %v2720_v0 = vmov 0.0|0.0   ;;  %v2721_v1 = vmov 0.0   ;;  %vm2722_vm0 = vmmov 0   ;;  %vm76_vm1 = vcmask 1043456  }
  0x27   :  { %2398 = vmatprep.subr.bf16.mxu1 %v2720_v0  ;;  %2195 = vmatprep.subr.mxu0 %v2721_v1  ;;  %vm72_vm2 = vcmask 31744   ;;  %v61_v2 = vld [vmem:[%s3108_s2] sm:$0xff]  ;;  %v62_v3 = vld [vmem:[%s3108_s2 + $0x8] sm:$0xff]  ;;  %v60_v4 = vld [vmem:[#allocation3] sm:$0xf]  ;;  %s2723_s22 = smov 64  }
  0x28   :  { %2197 = vmatprep.mubr.msk.f32.mxu0 %vm2722_vm0, %v2721_v1  ;;  %2208 = vmatprep.mubr.msk.f32.mxu1 %vm2722_vm0, %v2721_v1  ;;  %v2819_v5 = vpack.c.bf16 %v62_v3, %v61_v2  ;;  %v59_v6 = vld [vmem:[%s3106_s0] sm:$0xff]  ;;  %v63_v7 = vld [vmem:[%s3108_s2 + $0x10] sm:$0xff]  ;;  %v64_v8 = vld [vmem:[%s3108_s2 + $0x18] sm:$0xff]  ;;  %vm253_vm3 = vcmask 253952   ;;  %vm150_vm4 = vcmask 261120   ;;  %vm362_vm5 = vcmask 254977  }
  0x29   :  { %2196 = vmatpush3.msk.msra.mxu0 %vm76_vm1, %v60_v4  ;;  %v2832_v9 = vpack.c.bf16 %v64_v8, %v63_v7  ;;  %v2067_v12 = vld [vmem:[%s3109_s3] ss:$0 sm:$0xff]  ;;  %s2724_s3 = smov 32   ;;  %vm586_vm6 = vcmask 257027   ;;  %vm810_vm7 = vcmask 259077   ;;  %vm474_vm8 = vcmask 256002  }
  0x2a   :  { %2198 = vmatmul.mubr.msk.f32.vlgmr.msra.gmra.mrb[0].mxu0 %vm72_vm2, %v59_v6  ;;  %2404 = vmatprep.subr.bf16.mxu0 %v2720_v0  ;;  %vm698_vm9 = vcmask 258052   ;;  %vm922_vm10 = vcmask 260102   ;;  %vm1034_vm11 = vcmask 261127   ;;  %vm2049_vm12 = vcmask 32768  }
  0x2b   :  { %2400 = vmatpush3.bf16.msra.mxu1 %v2819_v5  ;;  %2406 = vmatpush3.bf16.msra.mxu0 %v2819_v5 }
  0x2c   :  { %2401 = vmatprep.subr.bf16.mxu1 %v2720_v0  ;;  %2407 = vmatprep.subr.bf16.mxu0 %v2720_v0 }
  0x2d   :  { %2219 = vmatprep.mubr.msk.f32.mxu0 %vm2722_vm0, %v2721_v1 }
  0x2f   :  { %2403 = vmatpush3.bf16.msra.mxu1 %v2832_v9  ;;  %2409 = vmatpush3.bf16.msra.mxu0 %v2832_v9 }
  0x30   :  { %2410 = vmatprep.subr.bf16.mxu1 %v2720_v0  ;;  %2416 = vmatprep.subr.bf16.mxu0 %v2720_v0 }
  0x32   :  { %2209 = vmatmul.mubr.f32.vlgmr.msra.gmra.mrb[0].mxu1 %v2721_v1 }
  0x33   :  { %2412 = vmatpush3.bf16.msra.mxu1 %v2819_v5  ;;  %2230 = vmatprep.mubr.msk.f32.mxu1 %vm2722_vm0, %v2721_v1 }
  0x34   :  { %2413 = vmatprep.subr.bf16.mxu1 %v2720_v0 }
  0x37   :  { %2415 = vmatpush3.bf16.msra.mxu1 %v2832_v9 }
  0x38   :  { %2422 = vmatprep.subr.bf16.mxu1 %v2720_v0 }
  0xfd   :  { %v146_v10 = vpop.f32.mrb[0].mxu0 }
  0xfe   :  { %v2199_v11 = vpop.f32.mrb[1].mxu0  ;;  %v2853_v13 = vadd.f32 %v2067_v12, %v146_v10 }
 0x105   :  { %v220_v14 = vpop.f32.mrb[0].mxu1 }
 0x106   :  { %v224_v15 = vadd.f32 %v220_v14, %v2853_v13  ;;  %v2210_v16 = vpop.f32.mrb[1].mxu1 }
 0x108   :  { %2516 = vtanh.f32 %v224_v15  ;;  %v2070_v18 = vmul.f32 -1.442695, %v224_v15 }
 0x10a   :  { %2518 = vpow2.f32 %v2070_v18 }
 0x112   :  { %v2517_v17 = vpop.eup %2516 }
 0x113   :  { %234 = vrot.lane.b32.xlu0 %v2517_v17, %s2723_s22 }
 0x114   :  { %v2519_v19 = vpop.eup %2518 }
 0x115   :  { %v228_v20 = vadd.f32 1.0, %v2519_v19 }
 0x117   :  { %2520 = vrcp.f32 %v228_v20 }
 0x121   :  { %v2521_v21 = vpop.eup %2520 }
 0x122   :  { %v232_v24 = vmul.f32 0.0, %v2521_v21 }
 0x185   :  { %v235_v22 = vpop.permute.xlu0 %234 }
 0x186   :  { %v237_v23 = vmul.f32 %v2521_v21, %v235_v22 }
 0x188   :  { %239 = vrot.lane.b32.xlu0 %v237_v23, %s2724_s3 }
 0x1fa   :  { %v240_v25 = vpop.permute.xlu0 %239 }
 0x1fb   :  { %v242_v26 = vadd.f32 %v240_v25, %v232_v24 }
 0x1fd   :  { %2522 = vtanh.f32 %v242_v26  ;;  %v339_v42 = vrot.slane %v242_v26, 7 }
 0x207   :  { %v2523_v27 = vpop.eup %2522 }
 0x208   :  { %245 = vrot.lane.b32.xlu1 %v2523_v27, %s2723_s22 }
 0x27a   :  { %v246_v28 = vpop.permute.xlu1 %245 }
 0x27b   :  { %v248_v29 = vmul.f32 %v2521_v21, %v246_v28 }
 0x27d   :  { %250 = vrot.lane.b32.xlu1 %v248_v29, %s2724_s3 }
 0x2ef   :  { %v251_v30 = vpop.permute.xlu1 %250 }
 0x2f0   :  { %254 = vst.msk [vmem:[#allocation2] sm:$0x1] %vm253_vm3, %v251_v30  ;;  %2220 = vmatmul.mubr.msk.f32.vlgmr.msra.gmra.mrb[2].mxu0 %vm150_vm4, %v251_v30 }
 0x2f1   :  { %2418 = vmatpush3.bf16.msra.mxu0 %v2819_v5  ;;  %2241 = vmatprep.mubr.msk.f32.mxu0 %vm2722_vm0, %v2721_v1 }
 0x2f2   :  { %2419 = vmatprep.subr.bf16.mxu0 %v2720_v0 }
 0x2f5   :  { %2421 = vmatpush3.bf16.msra.mxu0 %v2832_v9 }
 0x2f6   :  { %2428 = vmatprep.subr.bf16.mxu0 %v2720_v0 }
 0x3c3   :  { %v323_v31 = vpop.f32.mrb[2].mxu0 }
 0x3c4   :  { %v328_v32 = vrot.slane %v323_v31, 7  ;;  %v2221_v33 = vpop.f32.mrb[3].mxu0 }
 0x3c6   :  { %v330_v34 = vadd.f32 %v328_v32, %v2853_v13 }
 0x3c8   :  { %2524 = vtanh.f32 %v330_v34  ;;  %v2072_v36 = vmul.f32 -1.442695, %v330_v34 }
 0x3ca   :  { %2526 = vpow2.f32 %v2072_v36 }
 0x3d2   :  { %v2525_v35 = vpop.eup %2524 }
 0x3d3   :  { %343 = vrot.lane.b32.xlu0 %v2525_v35, %s2723_s22 }
 0x3d4   :  { %v2527_v37 = vpop.eup %2526 }
 0x3d5   :  { %v334_v38 = vadd.f32 1.0, %v2527_v37 }
 0x3d7   :  { %2528 = vrcp.f32 %v334_v38 }
 0x3e1   :  { %v2529_v39 = vpop.eup %2528 }
 0x3e2   :  { %v341_v43 = vmul.f32 %v2529_v39, %v339_v42 }
 0x445   :  { %v344_v40 = vpop.permute.xlu0 %343 }
 0x446   :  { %v346_v41 = vmul.f32 %v2529_v39, %v344_v40 }
 0x448   :  { %348 = vrot.lane.b32.xlu1 %v346_v41, %s2724_s3 }
 0x4ba   :  { %v349_v44 = vpop.permute.xlu1 %348 }
 0x4bb   :  { %v351_v45 = vadd.f32 %v349_v44, %v341_v43 }
 0x4bd   :  { %2530 = vtanh.f32 %v351_v45  ;;  %v451_v62 = vrot.slane %v351_v45, 7 }
 0x4c7   :  { %v2531_v46 = vpop.eup %2530 }
 0x4c8   :  { %354 = vrot.lane.b32.xlu0 %v2531_v46, %s2723_s22 }
 0x53a   :  { %v355_v47 = vpop.permute.xlu0 %354 }
 0x53b   :  { %v2871_v48 = vmul.f32 %v2529_v39, %v355_v47 }
 0x53d   :  { %v364_v49 = vrot.slane %v2871_v48, 1 }
 0x53f   :  { %365 = vrot.lane.b32.xlu1 %v364_v49, %s2724_s3 }
 0x5b1   :  { %v366_v50 = vpop.permute.xlu1 %365 }
 0x5b2   :  { %2231 = vmatmul.mubr.msk.f32.vlgmr.msra.gmra.mrb[2].mxu1 %vm150_vm4, %v366_v50 }
 0x5b3   :  { %2424 = vmatpush3.bf16.msra.mxu1 %v2819_v5  ;;  %2252 = vmatprep.mubr.msk.f32.mxu1 %vm2722_vm0, %v2721_v1 }
 0x5b4   :  { %2425 = vmatprep.subr.bf16.mxu1 %v2720_v0 }
 0x5b7   :  { %2427 = vmatpush3.bf16.msra.mxu1 %v2832_v9 }
 0x5b8   :  { %2434 = vmatprep.subr.bf16.mxu1 %v2720_v0 }
 0x685   :  { %v435_v51 = vpop.f32.mrb[2].mxu1 }
 0x686   :  { %v440_v52 = vrot.slane %v435_v51, 6  ;;  %v2232_v53 = vpop.f32.mrb[3].mxu1 }
 0x688   :  { %v442_v54 = vadd.f32 %v440_v52, %v2853_v13 }
 0x68a   :  { %2532 = vtanh.f32 %v442_v54  ;;  %v2074_v56 = vmul.f32 -1.442695, %v442_v54 }
 0x68c   :  { %2534 = vpow2.f32 %v2074_v56 }
 0x694   :  { %v2533_v55 = vpop.eup %2532 }
 0x695   :  { %455 = vrot.lane.b32.xlu0 %v2533_v55, %s2723_s22 }
 0x696   :  { %v2535_v57 = vpop.eup %2534 }
 0x697   :  { %v446_v58 = vadd.f32 1.0, %v2535_v57 }
 0x699   :  { %2536 = vrcp.f32 %v446_v58 }
 0x6a3   :  { %v2537_v59 = vpop.eup %2536 }
 0x6a4   :  { %v453_v63 = vmul.f32 %v2537_v59, %v451_v62 }
 0x707   :  { %v456_v60 = vpop.permute.xlu0 %455 }
 0x708   :  { %v458_v61 = vmul.f32 %v2537_v59, %v456_v60 }
 0x70a   :  { %460 = vrot.lane.b32.xlu1 %v458_v61, %s2724_s3 }
 0x77c   :  { %v461_v2 = vpop.permute.xlu1 %460 }
 0x77d   :  { %v463_v3 = vadd.f32 %v461_v2, %v453_v63 }
 0x77f   :  { %2538 = vtanh.f32 %v463_v3  ;;  %v563_v23 = vrot.slane %v463_v3, 7 }
 0x789   :  { %v2539_v4 = vpop.eup %2538 }
 0x78a   :  { %466 = vrot.lane.b32.xlu0 %v2539_v4, %s2723_s22 }
 0x7fc   :  { %v467_v6 = vpop.permute.xlu0 %466 }
 0x7fd   :  { %v2886_v7 = vmul.f32 %v2537_v59, %v467_v6 }
 0x7ff   :  { %v476_v8 = vrot.slane %v2886_v7, 2 }
 0x801   :  { %477 = vrot.lane.b32.xlu1 %v476_v8, %s2724_s3 }
 0x873   :  { %v478_v10 = vpop.permute.xlu1 %477 }
 0x874   :  { %2242 = vmatmul.mubr.msk.f32.vlgmr.msra.gmra.mrb[4].mxu0 %vm150_vm4, %v478_v10 }
 0x875   :  { %2430 = vmatpush3.bf16.msra.mxu0 %v2819_v5  ;;  %2263 = vmatprep.mubr.msk.f32.mxu0 %vm2722_vm0, %v2721_v1 }
 0x876   :  { %2431 = vmatprep.subr.bf16.mxu0 %v2720_v0 }
 0x879   :  { %2433 = vmatpush3.bf16.msra.mxu0 %v2832_v9 }
 0x87a   :  { %2440 = vmatprep.subr.bf16.mxu0 %v2720_v0 }
 0x947   :  { %v547_v11 = vpop.f32.mrb[4].mxu0 }
 0x948   :  { %v552_v12 = vrot.slane %v547_v11, 5  ;;  %v2243_v14 = vpop.f32.mrb[5].mxu0 }
 0x94a   :  { %v554_v15 = vadd.f32 %v552_v12, %v2853_v13 }
 0x94c   :  { %2540 = vtanh.f32 %v554_v15  ;;  %v2076_v17 = vmul.f32 -1.442695, %v554_v15 }
 0x94e   :  { %2542 = vpow2.f32 %v2076_v17 }
 0x956   :  { %v2541_v16 = vpop.eup %2540 }
 0x957   :  { %567 = vrot.lane.b32.xlu0 %v2541_v16, %s2723_s22 }
 0x958   :  { %v2543_v18 = vpop.eup %2542 }
 0x959   :  { %v558_v19 = vadd.f32 1.0, %v2543_v18 }
 0x95b   :  { %2544 = vrcp.f32 %v558_v19 }
 0x965   :  { %v2545_v20 = vpop.eup %2544 }
 0x966   :  { %v565_v24 = vmul.f32 %v2545_v20, %v563_v23 }
 0x9c9   :  { %v568_v21 = vpop.permute.xlu0 %567 }
 0x9ca   :  { %v570_v22 = vmul.f32 %v2545_v20, %v568_v21 }
 0x9cc   :  { %572 = vrot.lane.b32.xlu1 %v570_v22, %s2724_s3 }
 0xa3e   :  { %v573_v25 = vpop.permute.xlu1 %572 }
 0xa3f   :  { %v575_v26 = vadd.f32 %v573_v25, %v565_v24 }
 0xa41   :  { %2546 = vtanh.f32 %v575_v26  ;;  %v675_v43 = vrot.slane %v575_v26, 7 }
 0xa4b   :  { %v2547_v27 = vpop.eup %2546 }
 0xa4c   :  { %578 = vrot.lane.b32.xlu0 %v2547_v27, %s2723_s22 }
 0xabe   :  { %v579_v28 = vpop.permute.xlu0 %578 }
 0xabf   :  { %v2901_v29 = vmul.f32 %v2545_v20, %v579_v28 }
 0xac1   :  { %v588_v30 = vrot.slane %v2901_v29, 3 }
 0xac3   :  { %589 = vrot.lane.b32.xlu1 %v588_v30, %s2724_s3 }
 0xb35   :  { %v590_v31 = vpop.permute.xlu1 %589 }
 0xb36   :  { %2253 = vmatmul.mubr.msk.f32.vlgmr.msra.gmra.mrb[4].mxu1 %vm150_vm4, %v590_v31 }
 0xb37   :  { %2436 = vmatpush3.bf16.msra.mxu1 %v2819_v5  ;;  %2274 = vmatprep.mubr.msk.f32.mxu1 %vm2722_vm0, %v2721_v1 }
 0xb38   :  { %2437 = vmatprep.subr.bf16.mxu1 %v2720_v0 }
 0xb3b   :  { %2439 = vmatpush3.bf16.msra.mxu1 %v2832_v9 }
 0xb3c   :  { %2446 = vmatprep.subr.bf16.mxu1 %v2720_v0 }
 0xc09   :  { %v659_v32 = vpop.f32.mrb[4].mxu1 }
 0xc0a   :  { %v664_v33 = vrot.slane %v659_v32, 4  ;;  %v2254_v34 = vpop.f32.mrb[5].mxu1 }
 0xc0c   :  { %v666_v35 = vadd.f32 %v664_v33, %v2853_v13 }
 0xc0e   :  { %2548 = vtanh.f32 %v666_v35  ;;  %v2078_v37 = vmul.f32 -1.442695, %v666_v35 }
 0xc10   :  { %2550 = vpow2.f32 %v2078_v37 }
 0xc18   :  { %v2549_v36 = vpop.eup %2548 }
 0xc19   :  { %679 = vrot.lane.b32.xlu0 %v2549_v36, %s2723_s22 }
 0xc1a   :  { %v2551_v38 = vpop.eup %2550 }
 0xc1b   :  { %v670_v39 = vadd.f32 1.0, %v2551_v38 }
 0xc1d   :  { %2552 = vrcp.f32 %v670_v39 }
 0xc27   :  { %v2553_v40 = vpop.eup %2552 }
 0xc28   :  { %v677_v44 = vmul.f32 %v2553_v40, %v675_v43 }
 0xc8b   :  { %v680_v41 = vpop.permute.xlu0 %679 }
 0xc8c   :  { %v682_v42 = vmul.f32 %v2553_v40, %v680_v41 }
 0xc8e   :  { %684 = vrot.lane.b32.xlu1 %v682_v42, %s2724_s3 }
 0xd00   :  { %v685_v45 = vpop.permute.xlu1 %684 }
 0xd01   :  { %v687_v46 = vadd.f32 %v685_v45, %v677_v44 }
 0xd03   :  { %2554 = vtanh.f32 %v687_v46 }
 0xd0d   :  { %v2555_v47 = vpop.eup %2554 }
 0xd0e   :  { %690 = vrot.lane.b32.xlu0 %v2555_v47, %s2723_s22 }
 0xd80   :  { %v691_v49 = vpop.permute.xlu0 %690 }
 0xd81   :  { %v2916_v50 = vmul.f32 %v2553_v40, %v691_v49 }
 0xd83   :  { %v700_v51 = vrot.slane %v2916_v50, 4 }
 0xd85   :  { %701 = vrot.lane.b32.xlu1 %v700_v51, %s2724_s3 }
 0xdf7   :  { %v702_v52 = vpop.permute.xlu1 %701 }
 0xdf8   :  { %2264 = vmatmul.mubr.msk.f32.vlgmr.msra.gmra.mrb[6].mxu0 %vm150_vm4, %v702_v52 }
 0xdf9   :  { %2442 = vmatpush3.bf16.msra.mxu0 %v2819_v5  ;;  %2285 = vmatprep.mubr.msk.f32.mxu0 %vm2722_vm0, %v2721_v1 }
 0xdfa   :  { %2443 = vmatprep.subr.bf16.mxu0 %v2720_v0 }
 0xdfd   :  { %2445 = vmatpush3.bf16.msra.mxu0 %v2832_v9  ;;  %v787_v9 = vrot.slane %v687_v46, 7 }
 0xdfe   :  { %2452 = vmatprep.subr.bf16.mxu0 %v2720_v0 }
 0xecb   :  { %v771_v53 = vpop.f32.mrb[6].mxu0 }
 0xecc   :  { %v776_v54 = vrot.slane %v771_v53, 3  ;;  %v2265_v55 = vpop.f32.mrb[7].mxu0 }
 0xecd   :  { %v1041_v55 = vld [vmem:[#allocation6] sm:$0xff] }
 0xece   :  { %v778_v56 = vadd.f32 %v776_v54, %v2853_v13 }
 0xed0   :  { %2556 = vtanh.f32 %v778_v56  ;;  %v2080_v58 = vmul.f32 -1.442695, %v778_v56  ;;  %v1042_v56 = vld [vmem:[#allocation6 + $0x8] sm:$0xff] }
 0xed2   :  { %2558 = vpow2.f32 %v2080_v58  ;;  %v1043_v58 = vld [vmem:[#allocation6 + $0x10] sm:$0xff] }
 0xeda   :  { %v2557_v57 = vpop.eup %2556 }
 0xedb   :  { %791 = vrot.lane.b32.xlu0 %v2557_v57, %s2723_s22  ;;  %v2963_v57 = vpack.c.bf16 %v1042_v56, %v1041_v55 }
 0xedc   :  { %v2559_v5 = vpop.eup %2558 }
 0xedd   :  { %v782_v59 = vadd.f32 1.0, %v2559_v5 }
 0xedf   :  { %2560 = vrcp.f32 %v782_v59  ;;  %v1044_v59 = vld [vmem:[#allocation6 + $0x18] sm:$0xff] }
 0xee9   :  { %v2561_v60 = vpop.eup %2560 }
 0xeea   :  { %v789_v63 = vmul.f32 %v2561_v60, %v787_v9 }
 0xf4d   :  { %v792_v61 = vpop.permute.xlu0 %791 }
 0xf4e   :  { %v794_v62 = vmul.f32 %v2561_v60, %v792_v61 }
 0xf50   :  { %796 = vrot.lane.b32.xlu1 %v794_v62, %s2724_s3 }
 0xfc2   :  { %v797_v2 = vpop.permute.xlu1 %796 }
 0xfc3   :  { %v799_v3 = vadd.f32 %v797_v2, %v789_v63 }
 0xfc5   :  { %2562 = vtanh.f32 %v799_v3  ;;  %v899_v24 = vrot.slane %v799_v3, 7 }
 0xfcf   :  { %v2563_v4 = vpop.eup %2562 }
 0xfd0   :  { %802 = vrot.lane.b32.xlu0 %v2563_v4, %s2723_s22 }
0x1042   :  { %v803_v6 = vpop.permute.xlu0 %802 }
0x1043   :  { %v805_v8 = vmul.f32 %v2561_v60, %v803_v6  ;;  %v2973_v60 = vpack.c.bf16 %v1044_v59, %v1043_v58 }
0x1045   :  { %v812_v10 = vrot.slane %v805_v8, 5 }
0x1047   :  { %813 = vrot.lane.b32.xlu1 %v812_v10, %s2724_s3  ;;  %v2085_v10 = vld [vmem:[%s3112_s6] ss:$0 sm:$0xff] }
0x10b9   :  { %v814_v11 = vpop.permute.xlu1 %813 }
0x10ba   :  { %2275 = vmatmul.mubr.msk.f32.vlgmr.msra.gmra.mrb[6].mxu1 %vm150_vm4, %v814_v11 }
0x10bb   :  { %2296 = vmatprep.mubr.msk.f32.mxu1 %vm2722_vm0, %v2721_v1 }
0x118d   :  { %v883_v12 = vpop.f32.mrb[6].mxu1 }
0x118e   :  { %v888_v14 = vrot.slane %v883_v12, 2  ;;  %v2276_v15 = vpop.f32.mrb[7].mxu1 }
0x1190   :  { %v890_v16 = vadd.f32 %v888_v14, %v2853_v13 }
0x1192   :  { %2564 = vtanh.f32 %v890_v16  ;;  %v2082_v18 = vmul.f32 -1.442695, %v890_v16 }
0x1194   :  { %2566 = vpow2.f32 %v2082_v18 }
0x119c   :  { %v2565_v17 = vpop.eup %2564 }
0x119d   :  { %903 = vrot.lane.b32.xlu0 %v2565_v17, %s2723_s22 }
0x119e   :  { %v2567_v19 = vpop.eup %2566 }
0x119f   :  { %v894_v20 = vadd.f32 1.0, %v2567_v19 }
0x11a1   :  { %2568 = vrcp.f32 %v894_v20 }
0x11ab   :  { %v2569_v21 = vpop.eup %2568 }
0x11ac   :  { %v901_v25 = vmul.f32 %v2569_v21, %v899_v24 }
0x120f   :  { %v904_v22 = vpop.permute.xlu0 %903 }
0x1210   :  { %v906_v23 = vmul.f32 %v2569_v21, %v904_v22 }
0x1212   :  { %908 = vrot.lane.b32.xlu1 %v906_v23, %s2724_s3 }
0x1284   :  { %v909_v26 = vpop.permute.xlu1 %908 }
0x1285   :  { %v911_v27 = vadd.f32 %v909_v26, %v901_v25 }
0x1287   :  { %2570 = vtanh.f32 %v911_v27 }
0x1291   :  { %v2571_v28 = vpop.eup %2570 }
0x1292   :  { %914 = vrot.lane.b32.xlu0 %v2571_v28, %s2723_s22 }
0x1304   :  { %v915_v30 = vpop.permute.xlu0 %914 }
0x1305   :  { %v917_v31 = vmul.f32 %v2569_v21, %v915_v30 }
0x1307   :  { %v924_v32 = vrot.slane %v917_v31, 6 }
0x1309   :  { %925 = vrot.lane.b32.xlu1 %v924_v32, %s2724_s3 }
0x137b   :  { %v926_v33 = vpop.permute.xlu1 %925 }
0x137c   :  { %2286 = vmatmul.mubr.msk.f32.vlgmr.msra.gmra.mrb[8].mxu0 %vm150_vm4, %v926_v33 }
0x137d   :  { %2307 = vmatprep.mubr.msk.f32.mxu0 %vm2722_vm0, %v2721_v1  ;;  %2454 = vmatpush3.bf16.msra.mxu0 %v2963_v57 }
0x137e   :  { %2455 = vmatprep.subr.bf16.mxu0 %v2720_v0 }
0x1381   :  { %2457 = vmatpush3.bf16.msra.mxu0 %v2973_v60 }
0x1382   :  { %2464 = vmatprep.subr.bf16.mxu0 %v2720_v0 }
0x1384   :  { %2308 = vmatmul.mubr.f32.vlgmr.msra.gmra.mrb[10].mxu0 %v2721_v1 }
0x1385   :  { %2466 = vmatpush3.bf16.msra.mxu0 %v2963_v57  ;;  %2329 = vmatprep.mubr.msk.f32.mxu0 %vm2722_vm0, %v2721_v1 }
0x1386   :  { %2467 = vmatprep.subr.bf16.mxu0 %v2720_v0 }
0x1389   :  { %2469 = vmatpush3.bf16.msra.mxu0 %v2973_v60 }
0x138a   :  { %2476 = vmatprep.subr.bf16.mxu0 %v2720_v0 }
0x144f   :  { %v995_v34 = vpop.f32.mrb[8].mxu0 }
0x1450   :  { %v1000_v35 = vrot.slane %v995_v34, 1  ;;  %v2287_v36 = vpop.f32.mrb[9].mxu0 }
0x1452   :  { %v1002_v37 = vadd.f32 %v1000_v35, %v2853_v13  ;;  %v1011_v13 = vrot.slane %v911_v27, 7 }
0x1454   :  { %2572 = vtanh.f32 %v1002_v37  ;;  %v2084_v39 = vmul.f32 -1.442695, %v1002_v37 }
0x1456   :  { %2574 = vpow2.f32 %v2084_v39 }
0x1457   :  { %v1191_v6 = vpop.f32.mrb[10].mxu0 }
0x145e   :  { %v2573_v38 = vpop.eup %2572 }
0x145f   :  { %1015 = vrot.lane.b32.xlu0 %v2573_v38, %s2723_s22 }
0x1460   :  { %v2575_v40 = vpop.eup %2574 }
0x1461   :  { %v1006_v41 = vadd.f32 1.0, %v2575_v40 }
0x1463   :  { %2576 = vrcp.f32 %v1006_v41 }
0x146d   :  { %v2577_v42 = vpop.eup %2576 }
0x146e   :  { %v1013_v45 = vmul.f32 %v2577_v42, %v1011_v13 }
0x14d1   :  { %v1016_v43 = vpop.permute.xlu0 %1015 }
0x14d2   :  { %v1018_v44 = vmul.f32 %v2577_v42, %v1016_v43 }
0x14d4   :  { %1020 = vrot.lane.b32.xlu1 %v1018_v44, %s2724_s3 }
0x14d8   :  { %359 = vrot.lane.b32.xlu1 %v2871_v48, %s2724_s3  ;;  %v1037_v48 = vld [vmem:[%s3110_s4] sm:$0xff] }
0x14dc   :  { %583 = vrot.lane.b32.xlu1 %v2901_v29, %s2724_s3  ;;  %v1038_v29 = vld [vmem:[%s3110_s4 + $0x8] sm:$0xff] }
0x14dd   :  { %v2447_v54 = vpack.c.bf16 %v1038_v29, %v1037_v48 }
0x14df   :  { %2448 = vmatpush3.bf16.msra.mxu1 %v2447_v54 }
0x14e0   :  { %807 = vrot.lane.b32.xlu1 %v805_v8, %s2724_s3  ;;  %2449 = vmatprep.subr.bf16.mxu1 %v2720_v0  ;;  %v2309_v8 = vpop.f32.mrb[11].mxu0 }
0x1546   :  { %v1021_v46 = vpop.permute.xlu1 %1020 }
0x1547   :  { %v1023_v47 = vadd.f32 %v1021_v46, %v1013_v45 }
0x1549   :  { %2578 = vtanh.f32 %v1023_v47 }
0x154a   :  { %v360_v49 = vpop.permute.xlu1 %359 }
0x154b   :  { %363 = vst.msk [vmem:[#allocation2] sm:$0x2] %vm362_vm5, %v360_v49 }
0x154e   :  { %v584_v51 = vpop.permute.xlu1 %583 }
0x154f   :  { %587 = vst.msk [vmem:[#allocation2] sm:$0x8] %vm586_vm6, %v584_v51 }
0x1552   :  { %v808_v52 = vpop.permute.xlu1 %807 }
0x1553   :  { %v2579_v53 = vpop.eup %2578  ;;  %811 = vst.msk [vmem:[#allocation2] sm:$0x20] %vm810_vm7, %v808_v52 }
0x1554   :  { %1026 = vrot.lane.b32.xlu0 %v2579_v53, %s2723_s22 }
0x1558   :  { %471 = vrot.lane.b32.xlu0 %v2886_v7, %s2724_s3  ;;  %v1039_v7 = vld [vmem:[%s3110_s4 + $0x10] sm:$0xff] }
0x155c   :  { %695 = vrot.lane.b32.xlu0 %v2916_v50, %s2724_s3  ;;  %v1040_v50 = vld [vmem:[%s3110_s4 + $0x18] sm:$0xff] }
0x155d   :  { %v2450_v5 = vpack.c.bf16 %v1040_v50, %v1039_v7 }
0x155f   :  { %2451 = vmatpush3.bf16.msra.mxu1 %v2450_v5 }
0x1560   :  { %919 = vrot.lane.b32.xlu0 %v917_v31, %s2724_s3  ;;  %2458 = vmatprep.subr.bf16.mxu1 %v2720_v0 }
0x15c6   :  { %v1027_v61 = vpop.permute.xlu0 %1026 }
0x15c7   :  { %v1029_v62 = vmul.f32 %v2577_v42, %v1027_v61 }
0x15c9   :  { %1031 = vrot.lane.b32.xlu1 %v1029_v62, %s2724_s3 }
0x15ca   :  { %v472_v9 = vpop.permute.xlu0 %471 }
0x15cb   :  { %475 = vst.msk [vmem:[#allocation2] sm:$0x4] %vm474_vm8, %v472_v9 }
0x15ce   :  { %v696_v63 = vpop.permute.xlu0 %695 }
0x15cf   :  { %699 = vst.msk [vmem:[#allocation2] sm:$0x10] %vm698_vm9, %v696_v63 }
0x15d2   :  { %v920_v2 = vpop.permute.xlu0 %919 }
0x15d3   :  { %923 = vst.msk [vmem:[#allocation2] sm:$0x40] %vm922_vm10, %v920_v2 }
0x163b   :  { %v1032_v3 = vpop.permute.xlu1 %1031 }
0x163c   :  { %1035 = vst.msk [vmem:[#allocation2] sm:$0x80] %vm1034_vm11, %v1032_v3 }
0x1643   :  { %v1036_v4 = vld [vmem:[#allocation2] sm:$0xff] }
0x1644   :  { %2297 = vmatmul.mubr.msk.f32.vlgmr.msra.gmra.mrb[8].mxu1 %vm150_vm4, %v1036_v4 }
0x1645   :  { %2460 = vmatpush3.bf16.msra.mxu1 %v2963_v57  ;;  %2318 = vmatprep.mubr.msk.f32.mxu1 %vm2722_vm0, %v2721_v1 }
0x1646   :  { %2461 = vmatprep.subr.bf16.mxu1 %v2720_v0 }
0x1649   :  { %2463 = vmatpush3.bf16.msra.mxu1 %v2973_v60 }
0x164a   :  { %2470 = vmatprep.subr.bf16.mxu1 %v2720_v0 }
0x1717   :  { %v1121_v11 = vpop.f32.mrb[8].mxu1 }
0x1718   :  { %v2997_v12 = vadd.f32 %v2085_v10, %v1121_v11  ;;  %v2298_v14 = vpop.f32.mrb[9].mxu1 }
0x171a   :  { %v1195_v15 = vadd.f32 %v1191_v6, %v2997_v12 }
0x171c   :  { %2580 = vtanh.f32 %v1195_v15  ;;  %v2087_v17 = vmul.f32 -1.442695, %v1195_v15 }
0x171e   :  { %2582 = vpow2.f32 %v2087_v17 }
0x1726   :  { %v2581_v16 = vpop.eup %2580 }
0x1727   :  { %1205 = vrot.lane.b32.xlu0 %v2581_v16, %s2723_s22 }
0x1728   :  { %v2583_v18 = vpop.eup %2582 }
0x1729   :  { %v1199_v19 = vadd.f32 1.0, %v2583_v18 }
0x172b   :  { %2584 = vrcp.f32 %v1199_v19 }
0x1735   :  { %v2585_v20 = vpop.eup %2584 }
0x1736   :  { %v1203_v23 = vmul.f32 0.0, %v2585_v20 }
0x1799   :  { %v1206_v21 = vpop.permute.xlu0 %1205 }
0x179a   :  { %v1208_v22 = vmul.f32 %v2585_v20, %v1206_v21 }
0x179c   :  { %1210 = vrot.lane.b32.xlu1 %v1208_v22, %s2724_s3 }
0x180e   :  { %v1211_v24 = vpop.permute.xlu1 %1210 }
0x180f   :  { %v1213_v25 = vadd.f32 %v1211_v24, %v1203_v23 }
0x1811   :  { %2586 = vtanh.f32 %v1213_v25  ;;  %v1307_v42 = vrot.slane %v1213_v25, 7 }
0x181b   :  { %v2587_v26 = vpop.eup %2586 }
0x181c   :  { %1216 = vrot.lane.b32.xlu0 %v2587_v26, %s2723_s22 }
0x188e   :  { %v1217_v27 = vpop.permute.xlu0 %1216 }
0x188f   :  { %v1219_v28 = vmul.f32 %v2585_v20, %v1217_v27 }
0x1891   :  { %1221 = vrot.lane.b32.xlu1 %v1219_v28, %s2724_s3 }
0x1903   :  { %v1222_v30 = vpop.permute.xlu1 %1221 }
0x1904   :  { %2319 = vmatmul.mubr.msk.f32.vlgmr.msra.gmra.mrb[10].mxu1 %vm150_vm4, %v1222_v30 }
0x1905   :  { %2472 = vmatpush3.bf16.msra.mxu1 %v2963_v57  ;;  %2340 = vmatprep.mubr.msk.f32.mxu1 %vm2722_vm0, %v2721_v1 }
0x1906   :  { %2473 = vmatprep.subr.bf16.mxu1 %v2720_v0 }
0x1909   :  { %2475 = vmatpush3.bf16.msra.mxu1 %v2973_v60 }
0x190a   :  { %2482 = vmatprep.subr.bf16.mxu1 %v2720_v0 }
0x19d7   :  { %v1291_v31 = vpop.f32.mrb[10].mxu1 }
0x19d8   :  { %v1296_v32 = vrot.slane %v1291_v31, 7  ;;  %v2320_v33 = vpop.f32.mrb[11].mxu1 }
0x19da   :  { %v1298_v34 = vadd.f32 %v1296_v32, %v2997_v12 }
0x19dc   :  { %2588 = vtanh.f32 %v1298_v34  ;;  %v2089_v36 = vmul.f32 -1.442695, %v1298_v34 }
0x19de   :  { %2590 = vpow2.f32 %v2089_v36 }
0x19e6   :  { %v2589_v35 = vpop.eup %2588 }
0x19e7   :  { %1311 = vrot.lane.b32.xlu0 %v2589_v35, %s2723_s22 }
0x19e8   :  { %v2591_v37 = vpop.eup %2590 }
0x19e9   :  { %v1302_v38 = vadd.f32 1.0, %v2591_v37 }
0x19eb   :  { %2592 = vrcp.f32 %v1302_v38 }
0x19f5   :  { %v2593_v39 = vpop.eup %2592 }
0x19f6   :  { %v1309_v43 = vmul.f32 %v2593_v39, %v1307_v42 }
0x1a59   :  { %v1312_v40 = vpop.permute.xlu0 %1311 }
0x1a5a   :  { %v1314_v41 = vmul.f32 %v2593_v39, %v1312_v40 }
0x1a5c   :  { %1316 = vrot.lane.b32.xlu1 %v1314_v41, %s2724_s3 }
0x1ace   :  { %v1317_v44 = vpop.permute.xlu1 %1316 }
0x1acf   :  { %v1319_v13 = vadd.f32 %v1317_v44, %v1309_v43 }
0x1ad1   :  { %2594 = vtanh.f32 %v1319_v13  ;;  %v1414_v59 = vrot.slane %v1319_v13, 7 }
0x1adb   :  { %v2595_v45 = vpop.eup %2594 }
0x1adc   :  { %1322 = vrot.lane.b32.xlu0 %v2595_v45, %s2723_s22 }
0x1b4e   :  { %v1323_v46 = vpop.permute.xlu0 %1322 }
0x1b4f   :  { %v1325_v47 = vmul.f32 %v2593_v39, %v1323_v46 }
0x1b51   :  { %v1327_v49 = vrot.slane %v1325_v47, 1 }
0x1b53   :  { %1328 = vrot.lane.b32.xlu1 %v1327_v49, %s2724_s3 }
0x1bc5   :  { %v1329_v51 = vpop.permute.xlu1 %1328 }
0x1bc6   :  { %2330 = vmatmul.mubr.msk.f32.vlgmr.msra.gmra.mrb[12].mxu0 %vm150_vm4, %v1329_v51 }
0x1bc7   :  { %2478 = vmatpush3.bf16.msra.mxu0 %v2963_v57  ;;  %2351 = vmatprep.mubr.msk.f32.mxu0 %vm2722_vm0, %v2721_v1 }
0x1bc8   :  { %2479 = vmatprep.subr.bf16.mxu0 %v2720_v0 }
0x1bcb   :  { %2481 = vmatpush3.bf16.msra.mxu0 %v2973_v60 }
0x1bcc   :  { %2488 = vmatprep.subr.bf16.mxu0 %v2720_v0 }
0x1c99   :  { %v1398_v52 = vpop.f32.mrb[12].mxu0 }
0x1c9a   :  { %v1403_v53 = vrot.slane %v1398_v52, 6  ;;  %v2331_v48 = vpop.f32.mrb[13].mxu0 }
0x1c9c   :  { %v1405_v29 = vadd.f32 %v1403_v53, %v2997_v12 }
0x1c9e   :  { %2596 = vtanh.f32 %v1405_v29  ;;  %v2091_v55 = vmul.f32 -1.442695, %v1405_v29 }
0x1ca0   :  { %2598 = vpow2.f32 %v2091_v55 }
0x1ca8   :  { %v2597_v54 = vpop.eup %2596 }
0x1ca9   :  { %1418 = vrot.lane.b32.xlu0 %v2597_v54, %s2723_s22 }
0x1caa   :  { %v2599_v56 = vpop.eup %2598 }
0x1cab   :  { %v1409_v7 = vadd.f32 1.0, %v2599_v56 }
0x1cad   :  { %2600 = vrcp.f32 %v1409_v7 }
0x1cb7   :  { %v2601_v50 = vpop.eup %2600 }
0x1cb8   :  { %v1416_v61 = vmul.f32 %v2601_v50, %v1414_v59 }
0x1d1b   :  { %v1419_v58 = vpop.permute.xlu0 %1418 }
0x1d1c   :  { %v1421_v5 = vmul.f32 %v2601_v50, %v1419_v58 }
0x1d1e   :  { %1423 = vrot.lane.b32.xlu1 %v1421_v5, %s2724_s3 }
0x1d90   :  { %v1424_v62 = vpop.permute.xlu1 %1423 }
0x1d91   :  { %v1426_v9 = vadd.f32 %v1424_v62, %v1416_v61 }
0x1d93   :  { %2602 = vtanh.f32 %v1426_v9  ;;  %v1521_v22 = vrot.slane %v1426_v9, 7 }
0x1d9d   :  { %v2603_v63 = vpop.eup %2602 }
0x1d9e   :  { %1429 = vrot.lane.b32.xlu0 %v2603_v63, %s2723_s22 }
0x1e10   :  { %v1430_v2 = vpop.permute.xlu0 %1429 }
0x1e11   :  { %v1432_v3 = vmul.f32 %v2601_v50, %v1430_v2 }
0x1e13   :  { %v1434_v4 = vrot.slane %v1432_v3, 2 }
0x1e15   :  { %1435 = vrot.lane.b32.xlu1 %v1434_v4, %s2724_s3 }
0x1e87   :  { %v1436_v6 = vpop.permute.xlu1 %1435 }
0x1e88   :  { %2341 = vmatmul.mubr.msk.f32.vlgmr.msra.gmra.mrb[12].mxu1 %vm150_vm4, %v1436_v6 }
0x1e89   :  { %2484 = vmatpush3.bf16.msra.mxu1 %v2963_v57  ;;  %2362 = vmatprep.mubr.msk.f32.mxu1 %vm2722_vm0, %v2721_v1 }
0x1e8a   :  { %2485 = vmatprep.subr.bf16.mxu1 %v2720_v0 }
0x1e8d   :  { %2487 = vmatpush3.bf16.msra.mxu1 %v2973_v60 }
0x1e8e   :  { %2494 = vmatprep.subr.bf16.mxu1 %v2720_v0 }
0x1f5b   :  { %v1505_v8 = vpop.f32.mrb[12].mxu1 }
0x1f5c   :  { %v1510_v10 = vrot.slane %v1505_v8, 5  ;;  %v2342_v11 = vpop.f32.mrb[13].mxu1 }
0x1f5e   :  { %v1512_v14 = vadd.f32 %v1510_v10, %v2997_v12 }
0x1f60   :  { %2604 = vtanh.f32 %v1512_v14  ;;  %v2093_v16 = vmul.f32 -1.442695, %v1512_v14 }
0x1f62   :  { %2606 = vpow2.f32 %v2093_v16 }
0x1f6a   :  { %v2605_v15 = vpop.eup %2604 }
0x1f6b   :  { %1525 = vrot.lane.b32.xlu0 %v2605_v15, %s2723_s22 }
0x1f6c   :  { %v2607_v17 = vpop.eup %2606 }
0x1f6d   :  { %v1516_v18 = vadd.f32 1.0, %v2607_v17 }
0x1f6f   :  { %2608 = vrcp.f32 %v1516_v18 }
0x1f79   :  { %v2609_v19 = vpop.eup %2608 }
0x1f7a   :  { %v1523_v23 = vmul.f32 %v2609_v19, %v1521_v22 }
0x1fdd   :  { %v1526_v20 = vpop.permute.xlu0 %1525 }
0x1fde   :  { %v1528_v21 = vmul.f32 %v2609_v19, %v1526_v20 }
0x1fe0   :  { %1530 = vrot.lane.b32.xlu1 %v1528_v21, %s2724_s3 }
0x2052   :  { %v1531_v24 = vpop.permute.xlu1 %1530 }
0x2053   :  { %v1533_v25 = vadd.f32 %v1531_v24, %v1523_v23 }
0x2055   :  { %2610 = vtanh.f32 %v1533_v25  ;;  %v1628_v43 = vrot.slane %v1533_v25, 7 }
0x205f   :  { %v2611_v26 = vpop.eup %2610 }
0x2060   :  { %1536 = vrot.lane.b32.xlu0 %v2611_v26, %s2723_s22 }
0x20d2   :  { %v1537_v27 = vpop.permute.xlu0 %1536 }
0x20d3   :  { %v1539_v28 = vmul.f32 %v2609_v19, %v1537_v27 }
0x20d5   :  { %v1541_v30 = vrot.slane %v1539_v28, 3 }
0x20d7   :  { %1542 = vrot.lane.b32.xlu1 %v1541_v30, %s2724_s3 }
0x2149   :  { %v1543_v31 = vpop.permute.xlu1 %1542 }
0x214a   :  { %2352 = vmatmul.mubr.msk.f32.vlgmr.msra.gmra.mrb[14].mxu0 %vm150_vm4, %v1543_v31 }
0x214b   :  { %2490 = vmatpush3.bf16.msra.mxu0 %v2963_v57  ;;  %2373 = vmatprep.mubr.msk.f32.mxu0 %vm2722_vm0, %v2721_v1 }
0x214c   :  { %2491 = vmatprep.subr.bf16.mxu0 %v2720_v0 }
0x214f   :  { %2493 = vmatpush3.bf16.msra.mxu0 %v2973_v60 }
0x2150   :  { %2500 = vmatprep.subr.bf16.mxu0 %v2720_v0 }
0x221d   :  { %v1612_v32 = vpop.f32.mrb[14].mxu0 }
0x221e   :  { %v1617_v33 = vrot.slane %v1612_v32, 4  ;;  %v2353_v34 = vpop.f32.mrb[15].mxu0 }
0x2220   :  { %v1619_v35 = vadd.f32 %v1617_v33, %v2997_v12 }
0x2222   :  { %2612 = vtanh.f32 %v1619_v35  ;;  %v2095_v37 = vmul.f32 -1.442695, %v1619_v35 }
0x2224   :  { %2614 = vpow2.f32 %v2095_v37 }
0x222c   :  { %v2613_v36 = vpop.eup %2612 }
0x222d   :  { %1632 = vrot.lane.b32.xlu0 %v2613_v36, %s2723_s22 }
0x222e   :  { %v2615_v38 = vpop.eup %2614 }
0x222f   :  { %v1623_v39 = vadd.f32 1.0, %v2615_v38 }
0x2231   :  { %2616 = vrcp.f32 %v1623_v39 }
0x223b   :  { %v2617_v40 = vpop.eup %2616 }
0x223c   :  { %v1630_v44 = vmul.f32 %v2617_v40, %v1628_v43 }
0x229f   :  { %v1633_v41 = vpop.permute.xlu0 %1632 }
0x22a0   :  { %v1635_v42 = vmul.f32 %v2617_v40, %v1633_v41 }
0x22a2   :  { %1637 = vrot.lane.b32.xlu1 %v1635_v42, %s2724_s3 }
0x2314   :  { %v1638_v13 = vpop.permute.xlu1 %1637 }
0x2315   :  { %v1640_v45 = vadd.f32 %v1638_v13, %v1630_v44  ;;  %v1969_v13 = vld [vmem:[%s3113_s7 + $0x8] sm:$0xff] }
0x2317   :  { %2618 = vtanh.f32 %v1640_v45 }
0x2321   :  { %v2619_v46 = vpop.eup %2618 }
0x2322   :  { %1643 = vrot.lane.b32.xlu0 %v2619_v46, %s2723_s22 }
0x2394   :  { %v1644_v47 = vpop.permute.xlu0 %1643 }
0x2395   :  { %v1646_v49 = vmul.f32 %v2617_v40, %v1644_v47  ;;  %v1971_v47 = vld [vmem:[%s3113_s7 + $0x18] sm:$0xff] }
0x2397   :  { %v1648_v51 = vrot.slane %v1646_v49, 4 }
0x2399   :  { %1649 = vrot.lane.b32.xlu1 %v1648_v51, %s2724_s3 }
0x240b   :  { %v1650_v52 = vpop.permute.xlu1 %1649 }
0x240c   :  { %2363 = vmatmul.mubr.msk.f32.vlgmr.msra.gmra.mrb[14].mxu1 %vm150_vm4, %v1650_v52 }
0x240d   :  { %2496 = vmatpush3.bf16.msra.mxu1 %v2963_v57  ;;  %2384 = vmatprep.mubr.msk.f32.mxu1 %vm2722_vm0, %v2721_v1 }
0x240e   :  { %2497 = vmatprep.subr.bf16.mxu1 %v2720_v0 }
0x2411   :  { %2499 = vmatpush3.bf16.msra.mxu1 %v2973_v60  ;;  %v1735_v60 = vrot.slane %v1640_v45, 7  ;;  %v1970_v45 = vld [vmem:[%s3113_s7 + $0x10] sm:$0xff] }
0x2412   :  { %v2504_v49 = vpack.c.bf16 %v1971_v47, %v1970_v45 }
0x24df   :  { %v1719_v53 = vpop.f32.mrb[14].mxu1 }
0x24e0   :  { %v1724_v48 = vrot.slane %v1719_v53, 3  ;;  %v2364_v29 = vpop.f32.mrb[15].mxu1 }
0x24e2   :  { %v1726_v54 = vadd.f32 %v1724_v48, %v2997_v12 }
0x24e4   :  { %2620 = vtanh.f32 %v1726_v54  ;;  %v2097_v56 = vmul.f32 -1.442695, %v1726_v54  ;;  %v1972_v54 = vld [vmem:[%s3114_s8] sm:$0x1] }
0x24e6   :  { %2622 = vpow2.f32 %v2097_v56 }
0x24ee   :  { %v2621_v55 = vpop.eup %2620 }
0x24ef   :  { %1739 = vrot.lane.b32.xlu0 %v2621_v55, %s2723_s22 }
0x24f0   :  { %v2623_v7 = vpop.eup %2622 }
0x24f1   :  { %v1730_v57 = vadd.f32 1.0, %v2623_v7 }
0x24f3   :  { %2624 = vrcp.f32 %v1730_v57 }
0x24fd   :  { %v2625_v50 = vpop.eup %2624 }
0x24fe   :  { %v1737_v59 = vmul.f32 %v2625_v50, %v1735_v60 }
0x2561   :  { %v1740_v58 = vpop.permute.xlu0 %1739 }
0x2562   :  { %v1742_v5 = vmul.f32 %v2625_v50, %v1740_v58 }
0x2564   :  { %1744 = vrot.lane.b32.xlu1 %v1742_v5, %s2724_s3 }
0x25d6   :  { %v1745_v61 = vpop.permute.xlu1 %1744 }
0x25d7   :  { %v1747_v62 = vadd.f32 %v1745_v61, %v1737_v59 }
0x25d9   :  { %2626 = vtanh.f32 %v1747_v62 }
0x25e3   :  { %v2627_v9 = vpop.eup %2626 }
0x25e4   :  { %1750 = vrot.lane.b32.xlu0 %v2627_v9, %s2723_s22 }
0x2656   :  { %v1751_v63 = vpop.permute.xlu0 %1750 }
0x2657   :  { %v1753_v2 = vmul.f32 %v2625_v50, %v1751_v63 }
0x2659   :  { %v1755_v3 = vrot.slane %v1753_v2, 5 }
0x265b   :  { %1756 = vrot.lane.b32.xlu1 %v1755_v3, %s2724_s3 }
0x26cd   :  { %v1757_v4 = vpop.permute.xlu1 %1756 }
0x26ce   :  { %2374 = vmatmul.mubr.msk.f32.vlgmr.msra.gmra.mrb[16].mxu0 %vm150_vm4, %v1757_v4 }
0x26cf   :  { %2395 = vmatprep.mubr.msk.f32.mxu0 %vm2722_vm0, %v2721_v1  ;;  %v1842_v1 = vrot.slane %v1747_v62, 7 }
0x27a1   :  { %v1826_v6 = vpop.f32.mrb[16].mxu0 }
0x27a2   :  { %v1831_v8 = vrot.slane %v1826_v6, 2  ;;  %v2375_v10 = vpop.f32.mrb[17].mxu0 }
0x27a4   :  { %v1833_v11 = vadd.f32 %v1831_v8, %v2997_v12 }
0x27a6   :  { %2628 = vtanh.f32 %v1833_v11  ;;  %v2099_v15 = vmul.f32 -1.442695, %v1833_v11 }
0x27a8   :  { %2630 = vpow2.f32 %v2099_v15 }
0x27b0   :  { %v2629_v14 = vpop.eup %2628 }
0x27b1   :  { %1846 = vrot.lane.b32.xlu0 %v2629_v14, %s2723_s22 }
0x27b2   :  { %v2631_v16 = vpop.eup %2630 }
0x27b3   :  { %v1837_v17 = vadd.f32 1.0, %v2631_v16 }
0x27b5   :  { %2632 = vrcp.f32 %v1837_v17 }
0x27bf   :  { %v2633_v18 = vpop.eup %2632 }
0x27c0   :  { %v1844_v21 = vmul.f32 %v2633_v18, %v1842_v1 }
0x2823   :  { %v1847_v19 = vpop.permute.xlu0 %1846 }
0x2824   :  { %v1849_v20 = vmul.f32 %v2633_v18, %v1847_v19 }
0x2826   :  { %1851 = vrot.lane.b32.xlu1 %v1849_v20, %s2724_s3 }
0x2898   :  { %v1852_v22 = vpop.permute.xlu1 %1851 }
0x2899   :  { %v1854_v23 = vadd.f32 %v1852_v22, %v1844_v21 }
0x289b   :  { %2634 = vtanh.f32 %v1854_v23  ;;  %v1949_v41 = vrot.slane %v1854_v23, 7 }
0x28a5   :  { %v2635_v24 = vpop.eup %2634 }
0x28a6   :  { %1857 = vrot.lane.b32.xlu0 %v2635_v24, %s2723_s22 }
0x2918   :  { %v1858_v25 = vpop.permute.xlu0 %1857 }
0x2919   :  { %v1860_v26 = vmul.f32 %v2633_v18, %v1858_v25 }
0x291b   :  { %v1862_v27 = vrot.slane %v1860_v26, 6 }
0x291d   :  { %1863 = vrot.lane.b32.xlu1 %v1862_v27, %s2724_s3 }
0x298f   :  { %v1864_v28 = vpop.permute.xlu1 %1863 }
0x2990   :  { %2385 = vmatmul.mubr.msk.f32.vlgmr.msra.gmra.mrb[16].mxu1 %vm150_vm4, %v1864_v28 }
0x2a63   :  { %v1933_v30 = vpop.f32.mrb[16].mxu1 }
0x2a64   :  { %v1938_v31 = vrot.slane %v1933_v30, 1  ;;  %v2386_v32 = vpop.f32.mrb[17].mxu1 }
0x2a66   :  { %v1940_v33 = vadd.f32 %v1938_v31, %v2997_v12  ;;  %v1968_v12 = vld [vmem:[%s3113_s7] sm:$0xff]  ;;  %s2725_s7 = smov [#allocation8]  }
0x2a67   :  { %v2501_v46 = vpack.c.bf16 %v1969_v13, %v1968_v12  ;;  %s2057_s18 = sshll.u32 %s2725_s7, 4  ;;  %s2058_s18 = int_to_ptr.vmem [resolvable:$true] %s2057_s18 }
0x2a68   :  { %2636 = vtanh.f32 %v1940_v33  ;;  %v2101_v35 = vmul.f32 -1.442695, %v1940_v33  ;;  %s2688_s19 = scalar_lea.vmem %s2058_s18, 16  ;;  %s2692_s20 = scalar_lea.vmem %s2058_s18, 32 }
0x2a69   :  { %2502 = vmatpush3.bf16.msra.mxu0 %v2501_v46  ;;  %p2689_p2 = scmp.ne.s32.totalorder %s2058_s18, %s2688_s19  ;;  %p2693_p3 = scmp.lt.s32.totalorder %s2058_s18, %s2058_s18 }
0x2a6a   :  { %2638 = vpow2.f32 %v2101_v35  ;;  %2503 = vmatprep.subr.bf16.mxu0 %v2720_v0  ;;  %p2694_p4 = scmp.lt.s32.totalorder %s2692_s20, %s2688_s19 }
0x2a6c   :  { %p2695_p5 = por %p2694_p4, %p2693_p3 }
0x2a6d   :  { %2505 = vmatpush3.bf16.msra.mxu0 %v2504_v49 }
0x2a6e   :  { %p2696_p6 = pnand %p2695_p5, %p2689_p2 }
0x2a72   :  { %v2637_v34 = vpop.eup %2636 }
0x2a73   :  { %1953 = vrot.lane.b32.xlu0 %v2637_v34, %s2723_s22 }
0x2a74   :  { %v2639_v36 = vpop.eup %2638 }
0x2a75   :  { %v1944_v37 = vadd.f32 1.0, %v2639_v36 }
0x2a77   :  { %2640 = vrcp.f32 %v1944_v37 }
0x2a81   :  { %v2641_v38 = vpop.eup %2640 }
0x2a82   :  { %v1951_v42 = vmul.f32 %v2641_v38, %v1949_v41 }
0x2ae5   :  { %v1954_v39 = vpop.permute.xlu0 %1953 }
0x2ae6   :  { %v1956_v40 = vmul.f32 %v2641_v38, %v1954_v39 }
0x2ae8   :  { %1958 = vrot.lane.b32.xlu1 %v1956_v40, %s2724_s3 }
0x2b5a   :  { %v1959_v43 = vpop.permute.xlu1 %1958 }
0x2b5b   :  { %v1961_v44 = vadd.f32 %v1959_v43, %v1951_v42 }
0x2b5d   :  { %2642 = vtanh.f32 %v1961_v44 }
0x2b67   :  { %v2643_v51 = vpop.eup %2642 }
0x2b68   :  { %1964 = vrot.lane.b32.xlu0 %v2643_v51, %s2723_s22 }
0x2bda   :  { %v1965_v52 = vpop.permute.xlu0 %1964 }
0x2bdb   :  { %v1967_v53 = vmul.f32 %v2641_v38, %v1965_v52 }
0x2bdd   :  { %v1974_v48 = vrot.slane %v1967_v53, 7 }
0x2bdf   :  { %1975 = vrot.lane.b32.xlu1 %v1974_v48, %s2724_s3 }
0x2c51   :  { %v1976_v29 = vpop.permute.xlu1 %1975 }
0x2c52   :  { %2396 = vmatmul.mubr.msk.f32.vlgmr.msra.gmra.mrb[18].mxu0 %vm150_vm4, %v1976_v29 }
0x2d25   :  { %v2045_v55 = vpop.f32.mrb[18].mxu0 }
0x2d26   :  { %v2046_v0 = vadd.f32 %v2045_v55, %v1972_v54  ;;  %v2397_v56 = vpop.f32.mrb[19].mxu0 }
0x2d28   :  { %2050 = vst.msk [vmem:[#allocation8] sm:$0x1] %vm2049_vm12, %v2046_v0 }
0x2d29   :  { %2699 = shalt.err (!%p2696_p6)
}
0x2d2a   :  { %s2700_s8 = scalar_lea.hbm %s3115_s9, 16 }
0x2d2b   :  { %p2701_p7 = scmp.ne.s32.totalorder %s3115_s9, %s2700_s8  ;;  %p2704_p8 = scmp.lt.u32.totalorder %s2700_s8, %s3115_s9 }
0x2d2d   :  { %p2706_p9 = pnand %p2704_p8, %p2701_p7 }
0x2d2f   :  { %2709 = shalt.err (!%p2706_p9)
}
0x2d30   :  { %2060 = dma.vmem_to_hbm [thread:$0]  %s2058_s18, 16, %s3115_s9, [#allocation5]  }
0x2d31   :  { %2714 = dma.done.wait [#allocation5], 16  }
0x2d32   :  { %2715 = vsyncadd [#allocation5], 4294967280 }
0x2d33   :  { %2064 = vsyncpa [#allocation4], 1 }
0x2d34   :  { %2065 = vsyncpa [#allocation7], 1 }
0x2d35   :  { %2066 = vsyncpa [#allocation5], 1 }

</bundles_post_ra>
